<compile_context>
chip_gen: v7x
topology: tpu7x:2x2x1
jax: 0.10.0
libtpu: 0.0.40
codegen_flags: <defaults>
</compile_context>

<pallas_src>
import functools
import jax
import jax.numpy as jnp
from jax.experimental import pallas as pl
from jax.experimental.pallas import tpu as pltpu

C_PAD = 8   # channel blocks padded to one full sublane group


# ----------------------------------------------------------------------------
# Fused forward kernel
# ----------------------------------------------------------------------------
def _fused_kernel(x_ref,
                  w_fc1, b_fc1,
                  w_c1a, b_c1a, w_c1b, b_c1b,
                  w_fc2a_hbm, b_fc2a, w_fc2b_hbm, b_fc2b,
                  w_d0, b_d0, w_d1, b_d1, w_d2, b_d2, w_d3, b_d3, w_df, b_df,
                  w_p0, b_p0, w_p1, b_p1,
                  o_ref,
                  fc2a_vmem, fc2b_vmem, dma_sem,
                  *, B, L):
    f32 = jnp.float32
    bf16 = jnp.bfloat16
    BL = B * L
    relu = lambda v: jnp.maximum(v, 0.0)

    # ---- Kick off fc2 weight DMA so it overlaps fc1 + conv1 -----------------
    cp_a = pltpu.make_async_copy(w_fc2a_hbm, fc2a_vmem, dma_sem.at[0])
    cp_b = pltpu.make_async_copy(w_fc2b_hbm, fc2b_vmem, dma_sem.at[1])
    cp_a.start()
    cp_b.start()

    # ---- Hoisted 'same'-padding masks (per-segment lane index; batch-safe) --
    t_mod = jax.lax.broadcasted_iota(jnp.int32, (1, BL), 1) % L
    mask_pos = {d: t_mod < (L - d) for d in (1, 2, 4, 8)}   # tap x[t + d]
    mask_neg = {d: t_mod >= d for d in (1, 2, 4, 8)}        # tap x[t - d]

    def shift(x, off):
        """y[:, t] = x[:, t + off] within each length-L segment, zero-padded."""
        y = pltpu.roll(x, shift=(-off) % BL, axis=1)         # XLU lane rotate
        mask = mask_pos[off] if off > 0 else mask_neg[-off]
        return jnp.where(mask, y, 0.0)

    def conv(x, w_ref, b_ref, dil, k):
        """'same' 1-D conv as one im2col matmul over both batches.
        x: (C_in_pad, B*L); w_ref: (C_out_pad, k*C_in_pad) tap-major."""
        w = w_ref[...]
        b = b_ref[...]
        if k == 1:
            return jnp.dot(w, x, preferred_element_type=f32) + b
        stack = jnp.concatenate([shift(x, -dil), x, shift(x, dil)], axis=0)
        return jnp.dot(w, stack, preferred_element_type=f32) + b

    def to_cbl(h):
        """(B, 3L) batch-major rows -> (C_PAD, B*L) channel-major, lane-batched."""
        rows = [jnp.concatenate([h[b:b + 1, c * L:(c + 1) * L] for b in range(B)],
                                axis=1) for c in range(3)]
        rows.append(jnp.zeros((C_PAD - 3, BL), f32))
        return jnp.concatenate(rows, axis=0)

    def to_b3l(xc):
        """(C_PAD, B*L) -> (B, 3L); drops the zero-padded channels."""
        rows = [jnp.concatenate([xc[c:c + 1, b * L:(b + 1) * L] for c in range(3)],
                                axis=1) for b in range(B)]
        return jnp.concatenate(rows, axis=0)

    # ---- fc1 + ReLU ----------------------------------------------------------
    h = relu(jnp.dot(x_ref[...], w_fc1[...], preferred_element_type=f32)
             + b_fc1[...])                                    # (B, 3L)

    # ---- x = x + conv1(x)   (3 -> 16 -> 3, k=3), both batches in one matmul --
    xc = to_cbl(h)                                            # (8, B*L)
    t = relu(conv(xc, w_c1a, b_c1a, 1, 3))                    # (16, B*L)
    t = conv(t, w_c1b, b_c1b, 1, 3)                           # (8, B*L)
    xc = xc + t

    # ---- fc2 MLP (bf16 weights, f32 accumulate) ------------------------------
    flat = to_b3l(xc)                                         # (B, 3L)
    cp_a.wait()
    cp_b.wait()
    g = relu(jnp.dot(flat.astype(bf16), fc2a_vmem[...],
                     preferred_element_type=f32) + b_fc2a[...])        # (B, H)
    g = jnp.dot(g.astype(bf16), fc2b_vmem[...],
                preferred_element_type=f32) + b_fc2b[...]              # (B, 3L)

    # ---- x = x + dilated_block(x); x = x + pointwise(x) ----------------------
    xc = to_cbl(g)                                            # (8, B*L)
    t = relu(conv(xc, w_d0, b_d0, 1, 3))                      # (16, B*L)
    t = relu(conv(t, w_d1, b_d1, 2, 3))
    t = relu(conv(t, w_d2, b_d2, 4, 3))
    t = relu(conv(t, w_d3, b_d3, 8, 3))
    t = conv(t, w_df, b_df, 1, 1)                             # 1x1, 16 -> 3(pad 8)
    xc = xc + t
    p = relu(conv(xc, w_p0, b_p0, 1, 1))                      # 1x1, 3 -> 16
    p = conv(p, w_p1, b_p1, 1, 1)                             # 1x1, 16 -> 3(pad 8)
    xc = xc + p

    o_ref[...] = to_b3l(xc).astype(o_ref.dtype)               # (B, 3L)


# ----------------------------------------------------------------------------
# Wrapper: one pallas_call for the whole forward pass
# ----------------------------------------------------------------------------
def forward(x, p):
    B = x.shape[0]
    L = p["L"]
    args = [x,
            p["fc1_w"], p["fc1_b"],
            p["c1_w1"], p["c1_b1"], p["c1_w2"], p["c1_b2"],
            p["fc2a_w"], p["fc2a_b"], p["fc2b_w"], p["fc2b_b"],
            *p["dil"], *p["pw"]]
    HBM_ARGS = (7, 9)   # fc2a_w, fc2b_w stay in HBM; manually prefetched

    def full(a):
        return pl.BlockSpec(a.shape, lambda i: (0,) * a.ndim)

    in_specs = [pl.BlockSpec(memory_space=pl.ANY) if i in HBM_ARGS else full(a)
                for i, a in enumerate(args)]

    out = pl.pallas_call(
        functools.partial(_fused_kernel, B=B, L=L),
        out_shape=jax.ShapeDtypeStruct((B, 3 * L), jnp.float32),
        grid=(1,),
        in_specs=in_specs,
        out_specs=pl.BlockSpec((B, 3 * L), lambda i: (0, 0)),
        scratch_shapes=[
            pltpu.VMEM(p["fc2a_w"].shape, p["fc2a_w"].dtype),
            pltpu.VMEM(p["fc2b_w"].shape, p["fc2b_w"].dtype),
            pltpu.SemaphoreType.DMA((2,)),
        ],
        compiler_params=pltpu.CompilerParams(
            dimension_semantics=("arbitrary",)),
    )(*args)
    # Free metadata reshape outside the kernel (row-major view).
    return out.reshape(B, 3, L)


# ----------------------------------------------------------------------------
# Parameter construction (kaiming-normal weights / zero biases, like
# main_net.init_weights).  Conv weights are flattened host-side to lane-dense
# 2D (C_out_pad, K*C_in_pad), tap-major, with 3-channel dims zero-padded to 8;
# linear weights stored transposed (in, out); fc2 weights in bf16.
# ----------------------------------------------------------------------------
def kaiming(key, shape, fan_in):
    return jax.random.normal(key, shape, jnp.float32) * (2.0 / fan_in) ** 0.5


def flatten_conv(w, c_in_pad=None, c_out_pad=None):
    """(C_out, C_in, K) -> (C_out_pad, K*C_in_pad), tap-major, zero-padded."""
    C_out, C_in, K = w.shape
    cip = c_in_pad or C_in
    cop = c_out_pad or C_out
    w = jnp.pad(w, ((0, cop - C_out), (0, cip - C_in), (0, 0)))
    return jnp.transpose(w, (0, 2, 1)).reshape(cop, K * cip)


def make_params(key, L=128, H=128, CC=16):
    ks = list(jax.random.split(key, 16))
    z = lambda *s: jnp.zeros(s, jnp.float32)
    p = {"L": L}
    # fc1: Linear(6, 3L)
    p["fc1_w"] = kaiming(ks[0], (6, 3 * L), 6)
    p["fc1_b"] = z(1, 3 * L)
    # conv1: Conv1d(3, CC, 3) -> ReLU -> Conv1d(CC, 3, 3)
    p["c1_w1"] = flatten_conv(kaiming(ks[1], (CC, 3, 3), 3 * 3), c_in_pad=C_PAD)
    p["c1_b1"] = z(CC, 1)
    p["c1_w2"] = flatten_conv(kaiming(ks[2], (3, CC, 3), CC * 3), c_out_pad=C_PAD)
    p["c1_b2"] = z(C_PAD, 1)
    # fc2: Linear(3L, H) -> ReLU -> Linear(H, 3L)   (bf16 weights, f32 biases)
    p["fc2a_w"] = kaiming(ks[3], (3 * L, H), 3 * L).astype(jnp.bfloat16)
    p["fc2a_b"] = z(1, H)
    p["fc2b_w"] = kaiming(ks[4], (H, 3 * L), H).astype(jnp.bfloat16)
    p["fc2b_b"] = z(1, 3 * L)
    # dilated block: dilations [1, 2, 4, 8] then Conv1d(CC, 3, 1)
    p["dil"] = (
        flatten_conv(kaiming(ks[5], (CC, 3, 3), 3 * 3), c_in_pad=C_PAD),  z(CC, 1),
        flatten_conv(kaiming(ks[6], (CC, CC, 3), CC * 3)),                z(CC, 1),
        flatten_conv(kaiming(ks[7], (CC, CC, 3), CC * 3)),                z(CC, 1),
        flatten_conv(kaiming(ks[8], (CC, CC, 3), CC * 3)),                z(CC, 1),
        flatten_conv(kaiming(ks[9], (3, CC, 1), CC * 1), c_out_pad=C_PAD), z(C_PAD, 1),
    )
    # pointwise: Conv1d(3, CC, 1) -> ReLU -> Conv1d(CC, 3, 1)
    p["pw"] = (
        flatten_conv(kaiming(ks[10], (CC, 3, 1), 3 * 1), c_in_pad=C_PAD),  z(CC, 1),
        flatten_conv(kaiming(ks[11], (3, CC, 1), CC * 1), c_out_pad=C_PAD), z(C_PAD, 1),
    )
    return p


if __name__ == "__main__":
    key = jax.random.PRNGKey(0)
    pkey, xkey = jax.random.split(key)
    L, H, CC, B = 128, 128, 16, 2
    params = make_params(pkey, L=L, H=H, CC=CC)
    x = jax.random.normal(xkey, (B, 6), jnp.float32)
    out = forward(x, params)
    jax.block_until_ready(out)
    assert out.shape == (B, 3, L) and out.dtype == jnp.float32
    print("KERNEL_OK")
</pallas_src>

<mosaic_0001>
module attributes {stable_mosaic.version = 11 : i64} {
  func.func @_fused_kernel(%arg0: i32, %arg1: memref<2x6xf32, #tpu.memory_space<vmem>>, %arg2: memref<6x384xf32, #tpu.memory_space<vmem>>, %arg3: memref<1x384xf32, #tpu.memory_space<vmem>>, %arg4: memref<16x24xf32, #tpu.memory_space<vmem>>, %arg5: memref<16x1xf32, #tpu.memory_space<vmem>>, %arg6: memref<8x48xf32, #tpu.memory_space<vmem>>, %arg7: memref<8x1xf32, #tpu.memory_space<vmem>>, %arg8: memref<384x128xbf16, #tpu.memory_space<any>>, %arg9: memref<1x128xf32, #tpu.memory_space<vmem>>, %arg10: memref<128x384xbf16, #tpu.memory_space<any>>, %arg11: memref<1x384xf32, #tpu.memory_space<vmem>>, %arg12: memref<16x24xf32, #tpu.memory_space<vmem>>, %arg13: memref<16x1xf32, #tpu.memory_space<vmem>>, %arg14: memref<16x48xf32, #tpu.memory_space<vmem>>, %arg15: memref<16x1xf32, #tpu.memory_space<vmem>>, %arg16: memref<16x48xf32, #tpu.memory_space<vmem>>, %arg17: memref<16x1xf32, #tpu.memory_space<vmem>>, %arg18: memref<16x48xf32, #tpu.memory_space<vmem>>, %arg19: memref<16x1xf32, #tpu.memory_space<vmem>>, %arg20: memref<8x16xf32, #tpu.memory_space<vmem>>, %arg21: memref<8x1xf32, #tpu.memory_space<vmem>>, %arg22: memref<16x8xf32, #tpu.memory_space<vmem>>, %arg23: memref<16x1xf32, #tpu.memory_space<vmem>>, %arg24: memref<8x16xf32, #tpu.memory_space<vmem>>, %arg25: memref<8x1xf32, #tpu.memory_space<vmem>>, %arg26: memref<2x384xf32, #tpu.memory_space<vmem>>, %arg27: memref<384x128xbf16, #tpu.memory_space<vmem>>, %arg28: memref<128x384xbf16, #tpu.memory_space<vmem>>, %arg29: memref<2x!tpu.dma_semaphore, #tpu.memory_space<semaphore_mem>>) attributes {dimension_semantics = [#tpu.dimension_semantics<arbitrary>], iteration_bounds = array<i64: 1>, scalar_prefetch = 0 : i64, scratch_operands = 3 : i64, tpu.core_type = #tpu.core_type<tc>, window_params = [{pipeline_mode = #tpu.pipeline_mode<synchronous>, transform_indices = @transform_0, window_bounds = array<i64: 2, 6>}, {pipeline_mode = #tpu.pipeline_mode<synchronous>, transform_indices = @transform_1, window_bounds = array<i64: 6, 384>}, {pipeline_mode = #tpu.pipeline_mode<synchronous>, transform_indices = @transform_2, window_bounds = array<i64: 1, 384>}, {pipeline_mode = #tpu.pipeline_mode<synchronous>, transform_indices = @transform_3, window_bounds = array<i64: 16, 24>}, {pipeline_mode = #tpu.pipeline_mode<synchronous>, transform_indices = @transform_4, window_bounds = array<i64: 16, 1>}, {pipeline_mode = #tpu.pipeline_mode<synchronous>, transform_indices = @transform_5, window_bounds = array<i64: 8, 48>}, {pipeline_mode = #tpu.pipeline_mode<synchronous>, transform_indices = @transform_6, window_bounds = array<i64: 8, 1>}, {}, {pipeline_mode = #tpu.pipeline_mode<synchronous>, transform_indices = @transform_8, window_bounds = array<i64: 1, 128>}, {}, {pipeline_mode = #tpu.pipeline_mode<synchronous>, transform_indices = @transform_10, window_bounds = array<i64: 1, 384>}, {pipeline_mode = #tpu.pipeline_mode<synchronous>, transform_indices = @transform_11, window_bounds = array<i64: 16, 24>}, {pipeline_mode = #tpu.pipeline_mode<synchronous>, transform_indices = @transform_12, window_bounds = array<i64: 16, 1>}, {pipeline_mode = #tpu.pipeline_mode<synchronous>, transform_indices = @transform_13, window_bounds = array<i64: 16, 48>}, {pipeline_mode = #tpu.pipeline_mode<synchronous>, transform_indices = @transform_14, window_bounds = array<i64: 16, 1>}, {pipeline_mode = #tpu.pipeline_mode<synchronous>, transform_indices = @transform_15, window_bounds = array<i64: 16, 48>}, {pipeline_mode = #tpu.pipeline_mode<synchronous>, transform_indices = @transform_16, window_bounds = array<i64: 16, 1>}, {pipeline_mode = #tpu.pipeline_mode<synchronous>, transform_indices = @transform_17, window_bounds = array<i64: 16, 48>}, {pipeline_mode = #tpu.pipeline_mode<synchronous>, transform_indices = @transform_18, window_bounds = array<i64: 16, 1>}, {pipeline_mode = #tpu.pipeline_mode<synchronous>, transform_indices = @transform_19, window_bounds = array<i64: 8, 16>}, {pipeline_mode = #tpu.pipeline_mode<synchronous>, transform_indices = @transform_20, window_bounds = array<i64: 8, 1>}, {pipeline_mode = #tpu.pipeline_mode<synchronous>, transform_indices = @transform_21, window_bounds = array<i64: 16, 8>}, {pipeline_mode = #tpu.pipeline_mode<synchronous>, transform_indices = @transform_22, window_bounds = array<i64: 16, 1>}, {pipeline_mode = #tpu.pipeline_mode<synchronous>, transform_indices = @transform_23, window_bounds = array<i64: 8, 16>}, {pipeline_mode = #tpu.pipeline_mode<synchronous>, transform_indices = @transform_24, window_bounds = array<i64: 8, 1>}, {pipeline_mode = #tpu.pipeline_mode<synchronous>, transform_indices = @transform_25, window_bounds = array<i64: 2, 384>}]} {
    %c0_i32 = arith.constant 0 : i32
    %0 = tpu.memref_slice %arg29[%c0_i32] : memref<2x!tpu.dma_semaphore, #tpu.memory_space<semaphore_mem>> -> memref<1x!tpu.dma_semaphore, #tpu.memory_space<semaphore_mem>>
    %1 = tpu.memref_squeeze %0 : memref<1x!tpu.dma_semaphore, #tpu.memory_space<semaphore_mem>> -> memref<!tpu.dma_semaphore, #tpu.memory_space<semaphore_mem>>
    tpu.enqueue_dma source(%arg8 : memref<384x128xbf16, #tpu.memory_space<any>>) target(%arg27 : memref<384x128xbf16, #tpu.memory_space<vmem>>) target_semaphore(%1 : memref<!tpu.dma_semaphore, #tpu.memory_space<semaphore_mem>>)
    %c1_i32 = arith.constant 1 : i32
    %2 = tpu.memref_slice %arg29[%c1_i32] : memref<2x!tpu.dma_semaphore, #tpu.memory_space<semaphore_mem>> -> memref<1x!tpu.dma_semaphore, #tpu.memory_space<semaphore_mem>>
    %3 = tpu.memref_squeeze %2 : memref<1x!tpu.dma_semaphore, #tpu.memory_space<semaphore_mem>> -> memref<!tpu.dma_semaphore, #tpu.memory_space<semaphore_mem>>
    tpu.enqueue_dma source(%arg10 : memref<128x384xbf16, #tpu.memory_space<any>>) target(%arg28 : memref<128x384xbf16, #tpu.memory_space<vmem>>) target_semaphore(%3 : memref<!tpu.dma_semaphore, #tpu.memory_space<semaphore_mem>>)
    %4 = tpu.iota {dimensions = array<i32: 1>} : vector<1x256xi32>
    %c128_i32 = arith.constant 128 : i32
    %c0_i32_0 = arith.constant 0 : i32
    %5 = arith.cmpi eq, %c128_i32, %c0_i32_0 : i32
    %c1_i32_1 = arith.constant 1 : i32
    %6 = arith.select %5, %c1_i32_1, %c128_i32 : i32
    %7 = vector.broadcast %6 : i32 to vector<1x256xi32>
    %8 = arith.remsi %4, %7 : vector<1x256xi32>
    %c0_i32_2 = arith.constant 0 : i32
    %9 = vector.broadcast %c0_i32_2 : i32 to vector<1x256xi32>
    %10 = arith.cmpi ne, %8, %9 : vector<1x256xi32>
    %c0_i32_3 = arith.constant 0 : i32
    %11 = vector.broadcast %c0_i32_3 : i32 to vector<1x256xi32>
    %12 = arith.cmpi slt, %8, %11 : vector<1x256xi32>
    %c0_i32_4 = arith.constant 0 : i32
    %13 = arith.cmpi slt, %6, %c0_i32_4 : i32
    %14 = vector.broadcast %13 : i1 to vector<1x256xi1>
    %15 = vector.broadcast %14 : vector<1x256xi1> to vector<1x256xi1>
    %16 = arith.xori %12, %15 : vector<1x256xi1>
    %17 = arith.andi %16, %10 : vector<1x256xi1>
    %18 = vector.broadcast %6 : i32 to vector<1x256xi32>
    %19 = arith.addi %8, %18 : vector<1x256xi32>
    %20 = arith.select %17, %19, %8 : vector<1x256xi1>, vector<1x256xi32>
    %c127_i32 = arith.constant 127 : i32
    %21 = vector.broadcast %c127_i32 : i32 to vector<1x256xi32>
    %22 = arith.cmpi slt, %20, %21 : vector<1x256xi32>
    %c126_i32 = arith.constant 126 : i32
    %23 = vector.broadcast %c126_i32 : i32 to vector<1x256xi32>
    %24 = arith.cmpi slt, %20, %23 : vector<1x256xi32>
    %c124_i32 = arith.constant 124 : i32
    %25 = vector.broadcast %c124_i32 : i32 to vector<1x256xi32>
    %26 = arith.cmpi slt, %20, %25 : vector<1x256xi32>
    %c120_i32 = arith.constant 120 : i32
    %27 = vector.broadcast %c120_i32 : i32 to vector<1x256xi32>
    %28 = arith.cmpi slt, %20, %27 : vector<1x256xi32>
    %c1_i32_5 = arith.constant 1 : i32
    %29 = vector.broadcast %c1_i32_5 : i32 to vector<1x256xi32>
    %30 = arith.cmpi sge, %20, %29 : vector<1x256xi32>
    %c2_i32 = arith.constant 2 : i32
    %31 = vector.broadcast %c2_i32 : i32 to vector<1x256xi32>
    %32 = arith.cmpi sge, %20, %31 : vector<1x256xi32>
    %c4_i32 = arith.constant 4 : i32
    %33 = vector.broadcast %c4_i32 : i32 to vector<1x256xi32>
    %34 = arith.cmpi sge, %20, %33 : vector<1x256xi32>
    %c8_i32 = arith.constant 8 : i32
    %35 = vector.broadcast %c8_i32 : i32 to vector<1x256xi32>
    %36 = arith.cmpi sge, %20, %35 : vector<1x256xi32>
    %c0 = arith.constant 0 : index
    %c0_6 = arith.constant 0 : index
    %37 = vector.load %arg1[%c0, %c0_6] : memref<2x6xf32, #tpu.memory_space<vmem>>, vector<2x6xf32>
    %c0_7 = arith.constant 0 : index
    %c0_8 = arith.constant 0 : index
    %38 = vector.load %arg2[%c0_7, %c0_8] : memref<6x384xf32, #tpu.memory_space<vmem>>, vector<6x384xf32>
    %cst = arith.constant dense<0.000000e+00> : vector<2x384xf32>
    %39 = tpu.matmul %37, %38, %cst {dimension_numbers = #tpu.dot_dimension_numbers<[1], [0], [0], [1], [0, 0, 1, 1], [], []>} : vector<2x6xf32>, vector<6x384xf32>, vector<2x384xf32> -> vector<2x384xf32>
    %c0_9 = arith.constant 0 : index
    %c0_10 = arith.constant 0 : index
    %40 = vector.load %arg3[%c0_9, %c0_10] : memref<1x384xf32, #tpu.memory_space<vmem>>, vector<1x384xf32>
    %41 = vector.broadcast %40 : vector<1x384xf32> to vector<2x384xf32>
    %42 = arith.addf %39, %41 : vector<2x384xf32>
    %cst_11 = arith.constant 0.000000e+00 : f32
    %43 = vector.broadcast %cst_11 : f32 to vector<2x384xf32>
    %44 = arith.maximumf %42, %43 : vector<2x384xf32>
    %45 = vector.extract_strided_slice %44 {offsets = [0, 0], sizes = [1, 128], strides = [1, 1]} : vector<2x384xf32> to vector<1x128xf32>
    %46 = vector.extract_strided_slice %44 {offsets = [1, 0], sizes = [1, 128], strides = [1, 1]} : vector<2x384xf32> to vector<1x128xf32>
    %47 = tpu.concatenate %45, %46 in 1 : vector<1x128xf32>, vector<1x128xf32> -> vector<1x256xf32>
    %48 = vector.extract_strided_slice %44 {offsets = [0, 128], sizes = [1, 128], strides = [1, 1]} : vector<2x384xf32> to vector<1x128xf32>
    %49 = vector.extract_strided_slice %44 {offsets = [1, 128], sizes = [1, 128], strides = [1, 1]} : vector<2x384xf32> to vector<1x128xf32>
    %50 = tpu.concatenate %48, %49 in 1 : vector<1x128xf32>, vector<1x128xf32> -> vector<1x256xf32>
    %51 = vector.extract_strided_slice %44 {offsets = [0, 256], sizes = [1, 128], strides = [1, 1]} : vector<2x384xf32> to vector<1x128xf32>
    %52 = vector.extract_strided_slice %44 {offsets = [1, 256], sizes = [1, 128], strides = [1, 1]} : vector<2x384xf32> to vector<1x128xf32>
    %53 = tpu.concatenate %51, %52 in 1 : vector<1x128xf32>, vector<1x128xf32> -> vector<1x256xf32>
    %cst_12 = arith.constant 0.000000e+00 : f32
    %54 = vector.broadcast %cst_12 : f32 to vector<5x256xf32>
    %55 = tpu.concatenate %47, %50, %53, %54 in 0 : vector<1x256xf32>, vector<1x256xf32>, vector<1x256xf32>, vector<5x256xf32> -> vector<8x256xf32>
    %c0_13 = arith.constant 0 : index
    %c0_14 = arith.constant 0 : index
    %56 = vector.load %arg4[%c0_13, %c0_14] : memref<16x24xf32, #tpu.memory_space<vmem>>, vector<16x24xf32>
    %c0_15 = arith.constant 0 : index
    %c0_16 = arith.constant 0 : index
    %57 = vector.load %arg5[%c0_15, %c0_16] : memref<16x1xf32, #tpu.memory_space<vmem>>, vector<16x1xf32>
    %c1_i32_17 = arith.constant 1 : i32
    %58 = tpu.dynamic_rotate %55 by %c1_i32_17 dim 1 : vector<8x256xf32>, i32 -> vector<8x256xf32>
    %cst_18 = arith.constant 0.000000e+00 : f32
    %59 = vector.shape_cast %30 : vector<1x256xi1> to vector<1x256xi1>
    %60 = vector.broadcast %59 : vector<1x256xi1> to vector<8x256xi1>
    %61 = vector.broadcast %cst_18 : f32 to vector<8x256xf32>
    %62 = arith.select %60, %58, %61 : vector<8x256xi1>, vector<8x256xf32>
    %c255_i32 = arith.constant 255 : i32
    %63 = tpu.dynamic_rotate %55 by %c255_i32 dim 1 : vector<8x256xf32>, i32 -> vector<8x256xf32>
    %cst_19 = arith.constant 0.000000e+00 : f32
    %64 = vector.shape_cast %22 : vector<1x256xi1> to vector<1x256xi1>
    %65 = vector.broadcast %64 : vector<1x256xi1> to vector<8x256xi1>
    %66 = vector.broadcast %cst_19 : f32 to vector<8x256xf32>
    %67 = arith.select %65, %63, %66 : vector<8x256xi1>, vector<8x256xf32>
    %68 = tpu.concatenate %62, %55, %67 in 0 : vector<8x256xf32>, vector<8x256xf32>, vector<8x256xf32> -> vector<24x256xf32>
    %cst_20 = arith.constant dense<0.000000e+00> : vector<16x256xf32>
    %69 = tpu.matmul %56, %68, %cst_20 {dimension_numbers = #tpu.dot_dimension_numbers<[1], [0], [0], [1], [0, 0, 1, 1], [], []>} : vector<16x24xf32>, vector<24x256xf32>, vector<16x256xf32> -> vector<16x256xf32>
    %70 = vector.broadcast %57 : vector<16x1xf32> to vector<16x256xf32>
    %71 = arith.addf %69, %70 : vector<16x256xf32>
    %cst_21 = arith.constant 0.000000e+00 : f32
    %72 = vector.broadcast %cst_21 : f32 to vector<16x256xf32>
    %73 = arith.maximumf %71, %72 : vector<16x256xf32>
    %c0_22 = arith.constant 0 : index
    %c0_23 = arith.constant 0 : index
    %74 = vector.load %arg6[%c0_22, %c0_23] : memref<8x48xf32, #tpu.memory_space<vmem>>, vector<8x48xf32>
    %c0_24 = arith.constant 0 : index
    %c0_25 = arith.constant 0 : index
    %75 = vector.load %arg7[%c0_24, %c0_25] : memref<8x1xf32, #tpu.memory_space<vmem>>, vector<8x1xf32>
    %c1_i32_26 = arith.constant 1 : i32
    %76 = tpu.dynamic_rotate %73 by %c1_i32_26 dim 1 : vector<16x256xf32>, i32 -> vector<16x256xf32>
    %cst_27 = arith.constant 0.000000e+00 : f32
    %77 = vector.shape_cast %30 : vector<1x256xi1> to vector<1x256xi1>
    %78 = vector.broadcast %77 : vector<1x256xi1> to vector<16x256xi1>
    %79 = vector.broadcast %cst_27 : f32 to vector<16x256xf32>
    %80 = arith.select %78, %76, %79 : vector<16x256xi1>, vector<16x256xf32>
    %c255_i32_28 = arith.constant 255 : i32
    %81 = tpu.dynamic_rotate %73 by %c255_i32_28 dim 1 : vector<16x256xf32>, i32 -> vector<16x256xf32>
    %cst_29 = arith.constant 0.000000e+00 : f32
    %82 = vector.shape_cast %22 : vector<1x256xi1> to vector<1x256xi1>
    %83 = vector.broadcast %82 : vector<1x256xi1> to vector<16x256xi1>
    %84 = vector.broadcast %cst_29 : f32 to vector<16x256xf32>
    %85 = arith.select %83, %81, %84 : vector<16x256xi1>, vector<16x256xf32>
    %86 = tpu.concatenate %80, %73, %85 in 0 : vector<16x256xf32>, vector<16x256xf32>, vector<16x256xf32> -> vector<48x256xf32>
    %cst_30 = arith.constant dense<0.000000e+00> : vector<8x256xf32>
    %87 = tpu.matmul %74, %86, %cst_30 {dimension_numbers = #tpu.dot_dimension_numbers<[1], [0], [0], [1], [0, 0, 1, 1], [], []>} : vector<8x48xf32>, vector<48x256xf32>, vector<8x256xf32> -> vector<8x256xf32>
    %88 = vector.broadcast %75 : vector<8x1xf32> to vector<8x256xf32>
    %89 = arith.addf %87, %88 : vector<8x256xf32>
    %90 = arith.addf %55, %89 : vector<8x256xf32>
    %91 = vector.extract_strided_slice %90 {offsets = [0, 0], sizes = [1, 128], strides = [1, 1]} : vector<8x256xf32> to vector<1x128xf32>
    %92 = vector.extract_strided_slice %90 {offsets = [1, 0], sizes = [1, 128], strides = [1, 1]} : vector<8x256xf32> to vector<1x128xf32>
    %93 = vector.extract_strided_slice %90 {offsets = [2, 0], sizes = [1, 128], strides = [1, 1]} : vector<8x256xf32> to vector<1x128xf32>
    %94 = tpu.concatenate %91, %92, %93 in 1 : vector<1x128xf32>, vector<1x128xf32>, vector<1x128xf32> -> vector<1x384xf32>
    %95 = vector.extract_strided_slice %90 {offsets = [0, 128], sizes = [1, 128], strides = [1, 1]} : vector<8x256xf32> to vector<1x128xf32>
    %96 = vector.extract_strided_slice %90 {offsets = [1, 128], sizes = [1, 128], strides = [1, 1]} : vector<8x256xf32> to vector<1x128xf32>
    %97 = vector.extract_strided_slice %90 {offsets = [2, 128], sizes = [1, 128], strides = [1, 1]} : vector<8x256xf32> to vector<1x128xf32>
    %98 = tpu.concatenate %95, %96, %97 in 1 : vector<1x128xf32>, vector<1x128xf32>, vector<1x128xf32> -> vector<1x384xf32>
    %99 = tpu.concatenate %94, %98 in 0 : vector<1x384xf32>, vector<1x384xf32> -> vector<2x384xf32>
    %c0_i32_31 = arith.constant 0 : i32
    %100 = tpu.memref_slice %arg29[%c0_i32_31] : memref<2x!tpu.dma_semaphore, #tpu.memory_space<semaphore_mem>> -> memref<1x!tpu.dma_semaphore, #tpu.memory_space<semaphore_mem>>
    %101 = tpu.memref_squeeze %100 : memref<1x!tpu.dma_semaphore, #tpu.memory_space<semaphore_mem>> -> memref<!tpu.dma_semaphore, #tpu.memory_space<semaphore_mem>>
    tpu.wait_dma2 semaphore(%101 : memref<!tpu.dma_semaphore, #tpu.memory_space<semaphore_mem>>) src(%arg8 : memref<384x128xbf16, #tpu.memory_space<any>>) dst(%arg27 : memref<384x128xbf16, #tpu.memory_space<vmem>>)
    %c1_i32_32 = arith.constant 1 : i32
    %102 = tpu.memref_slice %arg29[%c1_i32_32] : memref<2x!tpu.dma_semaphore, #tpu.memory_space<semaphore_mem>> -> memref<1x!tpu.dma_semaphore, #tpu.memory_space<semaphore_mem>>
    %103 = tpu.memref_squeeze %102 : memref<1x!tpu.dma_semaphore, #tpu.memory_space<semaphore_mem>> -> memref<!tpu.dma_semaphore, #tpu.memory_space<semaphore_mem>>
    tpu.wait_dma2 semaphore(%103 : memref<!tpu.dma_semaphore, #tpu.memory_space<semaphore_mem>>) src(%arg10 : memref<128x384xbf16, #tpu.memory_space<any>>) dst(%arg28 : memref<128x384xbf16, #tpu.memory_space<vmem>>)
    %104 = arith.truncf %99 : vector<2x384xf32> to vector<2x384xbf16>
    %c0_33 = arith.constant 0 : index
    %c0_34 = arith.constant 0 : index
    %105 = vector.load %arg27[%c0_33, %c0_34] : memref<384x128xbf16, #tpu.memory_space<vmem>>, vector<384x128xbf16>
    %cst_35 = arith.constant dense<0.000000e+00> : vector<2x128xf32>
    %106 = tpu.matmul %104, %105, %cst_35 {dimension_numbers = #tpu.dot_dimension_numbers<[1], [0], [0], [1], [0, 0, 1, 1], [], []>} : vector<2x384xbf16>, vector<384x128xbf16>, vector<2x128xf32> -> vector<2x128xf32>
    %c0_36 = arith.constant 0 : index
    %c0_37 = arith.constant 0 : index
    %107 = vector.load %arg9[%c0_36, %c0_37] : memref<1x128xf32, #tpu.memory_space<vmem>>, vector<1x128xf32>
    %108 = vector.broadcast %107 : vector<1x128xf32> to vector<2x128xf32>
    %109 = arith.addf %106, %108 : vector<2x128xf32>
    %cst_38 = arith.constant 0.000000e+00 : f32
    %110 = vector.broadcast %cst_38 : f32 to vector<2x128xf32>
    %111 = arith.maximumf %109, %110 : vector<2x128xf32>
    %112 = arith.truncf %111 : vector<2x128xf32> to vector<2x128xbf16>
    %c0_39 = arith.constant 0 : index
    %c0_40 = arith.constant 0 : index
    %113 = vector.load %arg28[%c0_39, %c0_40] : memref<128x384xbf16, #tpu.memory_space<vmem>>, vector<128x384xbf16>
    %cst_41 = arith.constant dense<0.000000e+00> : vector<2x384xf32>
    %114 = tpu.matmul %112, %113, %cst_41 {dimension_numbers = #tpu.dot_dimension_numbers<[1], [0], [0], [1], [0, 0, 1, 1], [], []>} : vector<2x128xbf16>, vector<128x384xbf16>, vector<2x384xf32> -> vector<2x384xf32>
    %c0_42 = arith.constant 0 : index
    %c0_43 = arith.constant 0 : index
    %115 = vector.load %arg11[%c0_42, %c0_43] : memref<1x384xf32, #tpu.memory_space<vmem>>, vector<1x384xf32>
    %116 = vector.broadcast %115 : vector<1x384xf32> to vector<2x384xf32>
    %117 = arith.addf %114, %116 : vector<2x384xf32>
    %118 = vector.extract_strided_slice %117 {offsets = [0, 0], sizes = [1, 128], strides = [1, 1]} : vector<2x384xf32> to vector<1x128xf32>
    %119 = vector.extract_strided_slice %117 {offsets = [1, 0], sizes = [1, 128], strides = [1, 1]} : vector<2x384xf32> to vector<1x128xf32>
    %120 = tpu.concatenate %118, %119 in 1 : vector<1x128xf32>, vector<1x128xf32> -> vector<1x256xf32>
    %121 = vector.extract_strided_slice %117 {offsets = [0, 128], sizes = [1, 128], strides = [1, 1]} : vector<2x384xf32> to vector<1x128xf32>
    %122 = vector.extract_strided_slice %117 {offsets = [1, 128], sizes = [1, 128], strides = [1, 1]} : vector<2x384xf32> to vector<1x128xf32>
    %123 = tpu.concatenate %121, %122 in 1 : vector<1x128xf32>, vector<1x128xf32> -> vector<1x256xf32>
    %124 = vector.extract_strided_slice %117 {offsets = [0, 256], sizes = [1, 128], strides = [1, 1]} : vector<2x384xf32> to vector<1x128xf32>
    %125 = vector.extract_strided_slice %117 {offsets = [1, 256], sizes = [1, 128], strides = [1, 1]} : vector<2x384xf32> to vector<1x128xf32>
    %126 = tpu.concatenate %124, %125 in 1 : vector<1x128xf32>, vector<1x128xf32> -> vector<1x256xf32>
    %cst_44 = arith.constant 0.000000e+00 : f32
    %127 = vector.broadcast %cst_44 : f32 to vector<5x256xf32>
    %128 = tpu.concatenate %120, %123, %126, %127 in 0 : vector<1x256xf32>, vector<1x256xf32>, vector<1x256xf32>, vector<5x256xf32> -> vector<8x256xf32>
    %c0_45 = arith.constant 0 : index
    %c0_46 = arith.constant 0 : index
    %129 = vector.load %arg12[%c0_45, %c0_46] : memref<16x24xf32, #tpu.memory_space<vmem>>, vector<16x24xf32>
    %c0_47 = arith.constant 0 : index
    %c0_48 = arith.constant 0 : index
    %130 = vector.load %arg13[%c0_47, %c0_48] : memref<16x1xf32, #tpu.memory_space<vmem>>, vector<16x1xf32>
    %c1_i32_49 = arith.constant 1 : i32
    %131 = tpu.dynamic_rotate %128 by %c1_i32_49 dim 1 : vector<8x256xf32>, i32 -> vector<8x256xf32>
    %cst_50 = arith.constant 0.000000e+00 : f32
    %132 = vector.shape_cast %30 : vector<1x256xi1> to vector<1x256xi1>
    %133 = vector.broadcast %132 : vector<1x256xi1> to vector<8x256xi1>
    %134 = vector.broadcast %cst_50 : f32 to vector<8x256xf32>
    %135 = arith.select %133, %131, %134 : vector<8x256xi1>, vector<8x256xf32>
    %c255_i32_51 = arith.constant 255 : i32
    %136 = tpu.dynamic_rotate %128 by %c255_i32_51 dim 1 : vector<8x256xf32>, i32 -> vector<8x256xf32>
    %cst_52 = arith.constant 0.000000e+00 : f32
    %137 = vector.shape_cast %22 : vector<1x256xi1> to vector<1x256xi1>
    %138 = vector.broadcast %137 : vector<1x256xi1> to vector<8x256xi1>
    %139 = vector.broadcast %cst_52 : f32 to vector<8x256xf32>
    %140 = arith.select %138, %136, %139 : vector<8x256xi1>, vector<8x256xf32>
    %141 = tpu.concatenate %135, %128, %140 in 0 : vector<8x256xf32>, vector<8x256xf32>, vector<8x256xf32> -> vector<24x256xf32>
    %cst_53 = arith.constant dense<0.000000e+00> : vector<16x256xf32>
    %142 = tpu.matmul %129, %141, %cst_53 {dimension_numbers = #tpu.dot_dimension_numbers<[1], [0], [0], [1], [0, 0, 1, 1], [], []>} : vector<16x24xf32>, vector<24x256xf32>, vector<16x256xf32> -> vector<16x256xf32>
    %143 = vector.broadcast %130 : vector<16x1xf32> to vector<16x256xf32>
    %144 = arith.addf %142, %143 : vector<16x256xf32>
    %cst_54 = arith.constant 0.000000e+00 : f32
    %145 = vector.broadcast %cst_54 : f32 to vector<16x256xf32>
    %146 = arith.maximumf %144, %145 : vector<16x256xf32>
    %c0_55 = arith.constant 0 : index
    %c0_56 = arith.constant 0 : index
    %147 = vector.load %arg14[%c0_55, %c0_56] : memref<16x48xf32, #tpu.memory_space<vmem>>, vector<16x48xf32>
    %c0_57 = arith.constant 0 : index
    %c0_58 = arith.constant 0 : index
    %148 = vector.load %arg15[%c0_57, %c0_58] : memref<16x1xf32, #tpu.memory_space<vmem>>, vector<16x1xf32>
    %c2_i32_59 = arith.constant 2 : i32
    %149 = tpu.dynamic_rotate %146 by %c2_i32_59 dim 1 : vector<16x256xf32>, i32 -> vector<16x256xf32>
    %cst_60 = arith.constant 0.000000e+00 : f32
    %150 = vector.shape_cast %32 : vector<1x256xi1> to vector<1x256xi1>
    %151 = vector.broadcast %150 : vector<1x256xi1> to vector<16x256xi1>
    %152 = vector.broadcast %cst_60 : f32 to vector<16x256xf32>
    %153 = arith.select %151, %149, %152 : vector<16x256xi1>, vector<16x256xf32>
    %c254_i32 = arith.constant 254 : i32
    %154 = tpu.dynamic_rotate %146 by %c254_i32 dim 1 : vector<16x256xf32>, i32 -> vector<16x256xf32>
    %cst_61 = arith.constant 0.000000e+00 : f32
    %155 = vector.shape_cast %24 : vector<1x256xi1> to vector<1x256xi1>
    %156 = vector.broadcast %155 : vector<1x256xi1> to vector<16x256xi1>
    %157 = vector.broadcast %cst_61 : f32 to vector<16x256xf32>
    %158 = arith.select %156, %154, %157 : vector<16x256xi1>, vector<16x256xf32>
    %159 = tpu.concatenate %153, %146, %158 in 0 : vector<16x256xf32>, vector<16x256xf32>, vector<16x256xf32> -> vector<48x256xf32>
    %cst_62 = arith.constant dense<0.000000e+00> : vector<16x256xf32>
    %160 = tpu.matmul %147, %159, %cst_62 {dimension_numbers = #tpu.dot_dimension_numbers<[1], [0], [0], [1], [0, 0, 1, 1], [], []>} : vector<16x48xf32>, vector<48x256xf32>, vector<16x256xf32> -> vector<16x256xf32>
    %161 = vector.broadcast %148 : vector<16x1xf32> to vector<16x256xf32>
    %162 = arith.addf %160, %161 : vector<16x256xf32>
    %cst_63 = arith.constant 0.000000e+00 : f32
    %163 = vector.broadcast %cst_63 : f32 to vector<16x256xf32>
    %164 = arith.maximumf %162, %163 : vector<16x256xf32>
    %c0_64 = arith.constant 0 : index
    %c0_65 = arith.constant 0 : index
    %165 = vector.load %arg16[%c0_64, %c0_65] : memref<16x48xf32, #tpu.memory_space<vmem>>, vector<16x48xf32>
    %c0_66 = arith.constant 0 : index
    %c0_67 = arith.constant 0 : index
    %166 = vector.load %arg17[%c0_66, %c0_67] : memref<16x1xf32, #tpu.memory_space<vmem>>, vector<16x1xf32>
    %c4_i32_68 = arith.constant 4 : i32
    %167 = tpu.dynamic_rotate %164 by %c4_i32_68 dim 1 : vector<16x256xf32>, i32 -> vector<16x256xf32>
    %cst_69 = arith.constant 0.000000e+00 : f32
    %168 = vector.shape_cast %34 : vector<1x256xi1> to vector<1x256xi1>
    %169 = vector.broadcast %168 : vector<1x256xi1> to vector<16x256xi1>
    %170 = vector.broadcast %cst_69 : f32 to vector<16x256xf32>
    %171 = arith.select %169, %167, %170 : vector<16x256xi1>, vector<16x256xf32>
    %c252_i32 = arith.constant 252 : i32
    %172 = tpu.dynamic_rotate %164 by %c252_i32 dim 1 : vector<16x256xf32>, i32 -> vector<16x256xf32>
    %cst_70 = arith.constant 0.000000e+00 : f32
    %173 = vector.shape_cast %26 : vector<1x256xi1> to vector<1x256xi1>
    %174 = vector.broadcast %173 : vector<1x256xi1> to vector<16x256xi1>
    %175 = vector.broadcast %cst_70 : f32 to vector<16x256xf32>
    %176 = arith.select %174, %172, %175 : vector<16x256xi1>, vector<16x256xf32>
    %177 = tpu.concatenate %171, %164, %176 in 0 : vector<16x256xf32>, vector<16x256xf32>, vector<16x256xf32> -> vector<48x256xf32>
    %cst_71 = arith.constant dense<0.000000e+00> : vector<16x256xf32>
    %178 = tpu.matmul %165, %177, %cst_71 {dimension_numbers = #tpu.dot_dimension_numbers<[1], [0], [0], [1], [0, 0, 1, 1], [], []>} : vector<16x48xf32>, vector<48x256xf32>, vector<16x256xf32> -> vector<16x256xf32>
    %179 = vector.broadcast %166 : vector<16x1xf32> to vector<16x256xf32>
    %180 = arith.addf %178, %179 : vector<16x256xf32>
    %cst_72 = arith.constant 0.000000e+00 : f32
    %181 = vector.broadcast %cst_72 : f32 to vector<16x256xf32>
    %182 = arith.maximumf %180, %181 : vector<16x256xf32>
    %c0_73 = arith.constant 0 : index
    %c0_74 = arith.constant 0 : index
    %183 = vector.load %arg18[%c0_73, %c0_74] : memref<16x48xf32, #tpu.memory_space<vmem>>, vector<16x48xf32>
    %c0_75 = arith.constant 0 : index
    %c0_76 = arith.constant 0 : index
    %184 = vector.load %arg19[%c0_75, %c0_76] : memref<16x1xf32, #tpu.memory_space<vmem>>, vector<16x1xf32>
    %c8_i32_77 = arith.constant 8 : i32
    %185 = tpu.dynamic_rotate %182 by %c8_i32_77 dim 1 : vector<16x256xf32>, i32 -> vector<16x256xf32>
    %cst_78 = arith.constant 0.000000e+00 : f32
    %186 = vector.shape_cast %36 : vector<1x256xi1> to vector<1x256xi1>
    %187 = vector.broadcast %186 : vector<1x256xi1> to vector<16x256xi1>
    %188 = vector.broadcast %cst_78 : f32 to vector<16x256xf32>
    %189 = arith.select %187, %185, %188 : vector<16x256xi1>, vector<16x256xf32>
    %c248_i32 = arith.constant 248 : i32
    %190 = tpu.dynamic_rotate %182 by %c248_i32 dim 1 : vector<16x256xf32>, i32 -> vector<16x256xf32>
    %cst_79 = arith.constant 0.000000e+00 : f32
    %191 = vector.shape_cast %28 : vector<1x256xi1> to vector<1x256xi1>
    %192 = vector.broadcast %191 : vector<1x256xi1> to vector<16x256xi1>
    %193 = vector.broadcast %cst_79 : f32 to vector<16x256xf32>
    %194 = arith.select %192, %190, %193 : vector<16x256xi1>, vector<16x256xf32>
    %195 = tpu.concatenate %189, %182, %194 in 0 : vector<16x256xf32>, vector<16x256xf32>, vector<16x256xf32> -> vector<48x256xf32>
    %cst_80 = arith.constant dense<0.000000e+00> : vector<16x256xf32>
    %196 = tpu.matmul %183, %195, %cst_80 {dimension_numbers = #tpu.dot_dimension_numbers<[1], [0], [0], [1], [0, 0, 1, 1], [], []>} : vector<16x48xf32>, vector<48x256xf32>, vector<16x256xf32> -> vector<16x256xf32>
    %197 = vector.broadcast %184 : vector<16x1xf32> to vector<16x256xf32>
    %198 = arith.addf %196, %197 : vector<16x256xf32>
    %cst_81 = arith.constant 0.000000e+00 : f32
    %199 = vector.broadcast %cst_81 : f32 to vector<16x256xf32>
    %200 = arith.maximumf %198, %199 : vector<16x256xf32>
    %c0_82 = arith.constant 0 : index
    %c0_83 = arith.constant 0 : index
    %201 = vector.load %arg20[%c0_82, %c0_83] : memref<8x16xf32, #tpu.memory_space<vmem>>, vector<8x16xf32>
    %c0_84 = arith.constant 0 : index
    %c0_85 = arith.constant 0 : index
    %202 = vector.load %arg21[%c0_84, %c0_85] : memref<8x1xf32, #tpu.memory_space<vmem>>, vector<8x1xf32>
    %cst_86 = arith.constant dense<0.000000e+00> : vector<8x256xf32>
    %203 = tpu.matmul %201, %200, %cst_86 {dimension_numbers = #tpu.dot_dimension_numbers<[1], [0], [0], [1], [0, 0, 1, 1], [], []>} : vector<8x16xf32>, vector<16x256xf32>, vector<8x256xf32> -> vector<8x256xf32>
    %204 = vector.broadcast %202 : vector<8x1xf32> to vector<8x256xf32>
    %205 = arith.addf %203, %204 : vector<8x256xf32>
    %206 = arith.addf %128, %205 : vector<8x256xf32>
    %c0_87 = arith.constant 0 : index
    %c0_88 = arith.constant 0 : index
    %207 = vector.load %arg22[%c0_87, %c0_88] : memref<16x8xf32, #tpu.memory_space<vmem>>, vector<16x8xf32>
    %c0_89 = arith.constant 0 : index
    %c0_90 = arith.constant 0 : index
    %208 = vector.load %arg23[%c0_89, %c0_90] : memref<16x1xf32, #tpu.memory_space<vmem>>, vector<16x1xf32>
    %cst_91 = arith.constant dense<0.000000e+00> : vector<16x256xf32>
    %209 = tpu.matmul %207, %206, %cst_91 {dimension_numbers = #tpu.dot_dimension_numbers<[1], [0], [0], [1], [0, 0, 1, 1], [], []>} : vector<16x8xf32>, vector<8x256xf32>, vector<16x256xf32> -> vector<16x256xf32>
    %210 = vector.broadcast %208 : vector<16x1xf32> to vector<16x256xf32>
    %211 = arith.addf %209, %210 : vector<16x256xf32>
    %cst_92 = arith.constant 0.000000e+00 : f32
    %212 = vector.broadcast %cst_92 : f32 to vector<16x256xf32>
    %213 = arith.maximumf %211, %212 : vector<16x256xf32>
    %c0_93 = arith.constant 0 : index
    %c0_94 = arith.constant 0 : index
    %214 = vector.load %arg24[%c0_93, %c0_94] : memref<8x16xf32, #tpu.memory_space<vmem>>, vector<8x16xf32>
    %c0_95 = arith.constant 0 : index
    %c0_96 = arith.constant 0 : index
    %215 = vector.load %arg25[%c0_95, %c0_96] : memref<8x1xf32, #tpu.memory_space<vmem>>, vector<8x1xf32>
    %cst_97 = arith.constant dense<0.000000e+00> : vector<8x256xf32>
    %216 = tpu.matmul %214, %213, %cst_97 {dimension_numbers = #tpu.dot_dimension_numbers<[1], [0], [0], [1], [0, 0, 1, 1], [], []>} : vector<8x16xf32>, vector<16x256xf32>, vector<8x256xf32> -> vector<8x256xf32>
    %217 = vector.broadcast %215 : vector<8x1xf32> to vector<8x256xf32>
    %218 = arith.addf %216, %217 : vector<8x256xf32>
    %219 = arith.addf %206, %218 : vector<8x256xf32>
    %220 = vector.extract_strided_slice %219 {offsets = [0, 0], sizes = [1, 128], strides = [1, 1]} : vector<8x256xf32> to vector<1x128xf32>
    %221 = vector.extract_strided_slice %219 {offsets = [1, 0], sizes = [1, 128], strides = [1, 1]} : vector<8x256xf32> to vector<1x128xf32>
    %222 = vector.extract_strided_slice %219 {offsets = [2, 0], sizes = [1, 128], strides = [1, 1]} : vector<8x256xf32> to vector<1x128xf32>
    %223 = tpu.concatenate %220, %221, %222 in 1 : vector<1x128xf32>, vector<1x128xf32>, vector<1x128xf32> -> vector<1x384xf32>
    %224 = vector.extract_strided_slice %219 {offsets = [0, 128], sizes = [1, 128], strides = [1, 1]} : vector<8x256xf32> to vector<1x128xf32>
    %225 = vector.extract_strided_slice %219 {offsets = [1, 128], sizes = [1, 128], strides = [1, 1]} : vector<8x256xf32> to vector<1x128xf32>
    %226 = vector.extract_strided_slice %219 {offsets = [2, 128], sizes = [1, 128], strides = [1, 1]} : vector<8x256xf32> to vector<1x128xf32>
    %227 = tpu.concatenate %224, %225, %226 in 1 : vector<1x128xf32>, vector<1x128xf32>, vector<1x128xf32> -> vector<1x384xf32>
    %228 = tpu.concatenate %223, %227 in 0 : vector<1x384xf32>, vector<1x384xf32> -> vector<2x384xf32>
    %c0_98 = arith.constant 0 : index
    %c0_99 = arith.constant 0 : index
    %229 = vector.load %arg26[%c0_98, %c0_99] : memref<2x384xf32, #tpu.memory_space<vmem>>, vector<2x384xf32>
    tpu.vector_store %arg26[%c0_98, %c0_99], %228 {strides = array<i32>} : memref<2x384xf32, #tpu.memory_space<vmem>>, vector<2x384xf32>,
    return
  }
  func.func @transform_0(%arg0: i32) -> (i32, i32) {
    %c0_i32 = arith.constant 0 : i32
    %c0_i32_0 = arith.constant 0 : i32
    %c0_i32_1 = arith.constant 0 : i32
    return %c0_i32, %c0_i32_0 : i32, i32
  }
  func.func @transform_1(%arg0: i32) -> (i32, i32) {
    %c0_i32 = arith.constant 0 : i32
    %c0_i32_0 = arith.constant 0 : i32
    %c0_i32_1 = arith.constant 0 : i32
    return %c0_i32, %c0_i32_0 : i32, i32
  }
  func.func @transform_2(%arg0: i32) -> (i32, i32) {
    %c0_i32 = arith.constant 0 : i32
    %c0_i32_0 = arith.constant 0 : i32
    %c0_i32_1 = arith.constant 0 : i32
    return %c0_i32, %c0_i32_0 : i32, i32
  }
  func.func @transform_3(%arg0: i32) -> (i32, i32) {
    %c0_i32 = arith.constant 0 : i32
    %c0_i32_0 = arith.constant 0 : i32
    %c0_i32_1 = arith.constant 0 : i32
    return %c0_i32, %c0_i32_0 : i32, i32
  }
  func.func @transform_4(%arg0: i32) -> (i32, i32) {
    %c0_i32 = arith.constant 0 : i32
    %c0_i32_0 = arith.constant 0 : i32
    %c0_i32_1 = arith.constant 0 : i32
    return %c0_i32, %c0_i32_0 : i32, i32
  }
  func.func @transform_5(%arg0: i32) -> (i32, i32) {
    %c0_i32 = arith.constant 0 : i32
    %c0_i32_0 = arith.constant 0 : i32
    %c0_i32_1 = arith.constant 0 : i32
    return %c0_i32, %c0_i32_0 : i32, i32
  }
  func.func @transform_6(%arg0: i32) -> (i32, i32) {
    %c0_i32 = arith.constant 0 : i32
    %c0_i32_0 = arith.constant 0 : i32
    %c0_i32_1 = arith.constant 0 : i32
    return %c0_i32, %c0_i32_0 : i32, i32
  }
  func.func @transform_8(%arg0: i32) -> (i32, i32) {
    %c0_i32 = arith.constant 0 : i32
    %c0_i32_0 = arith.constant 0 : i32
    %c0_i32_1 = arith.constant 0 : i32
    return %c0_i32, %c0_i32_0 : i32, i32
  }
  func.func @transform_10(%arg0: i32) -> (i32, i32) {
    %c0_i32 = arith.constant 0 : i32
    %c0_i32_0 = arith.constant 0 : i32
    %c0_i32_1 = arith.constant 0 : i32
    return %c0_i32, %c0_i32_0 : i32, i32
  }
  func.func @transform_11(%arg0: i32) -> (i32, i32) {
    %c0_i32 = arith.constant 0 : i32
    %c0_i32_0 = arith.constant 0 : i32
    %c0_i32_1 = arith.constant 0 : i32
    return %c0_i32, %c0_i32_0 : i32, i32
  }
  func.func @transform_12(%arg0: i32) -> (i32, i32) {
    %c0_i32 = arith.constant 0 : i32
    %c0_i32_0 = arith.constant 0 : i32
    %c0_i32_1 = arith.constant 0 : i32
    return %c0_i32, %c0_i32_0 : i32, i32
  }
  func.func @transform_13(%arg0: i32) -> (i32, i32) {
    %c0_i32 = arith.constant 0 : i32
    %c0_i32_0 = arith.constant 0 : i32
    %c0_i32_1 = arith.constant 0 : i32
    return %c0_i32, %c0_i32_0 : i32, i32
  }
  func.func @transform_14(%arg0: i32) -> (i32, i32) {
    %c0_i32 = arith.constant 0 : i32
    %c0_i32_0 = arith.constant 0 : i32
    %c0_i32_1 = arith.constant 0 : i32
    return %c0_i32, %c0_i32_0 : i32, i32
  }
  func.func @transform_15(%arg0: i32) -> (i32, i32) {
    %c0_i32 = arith.constant 0 : i32
    %c0_i32_0 = arith.constant 0 : i32
    %c0_i32_1 = arith.constant 0 : i32
    return %c0_i32, %c0_i32_0 : i32, i32
  }
  func.func @transform_16(%arg0: i32) -> (i32, i32) {
    %c0_i32 = arith.constant 0 : i32
    %c0_i32_0 = arith.constant 0 : i32
    %c0_i32_1 = arith.constant 0 : i32
    return %c0_i32, %c0_i32_0 : i32, i32
  }
  func.func @transform_17(%arg0: i32) -> (i32, i32) {
    %c0_i32 = arith.constant 0 : i32
    %c0_i32_0 = arith.constant 0 : i32
    %c0_i32_1 = arith.constant 0 : i32
    return %c0_i32, %c0_i32_0 : i32, i32
  }
  func.func @transform_18(%arg0: i32) -> (i32, i32) {
    %c0_i32 = arith.constant 0 : i32
    %c0_i32_0 = arith.constant 0 : i32
    %c0_i32_1 = arith.constant 0 : i32
    return %c0_i32, %c0_i32_0 : i32, i32
  }
  func.func @transform_19(%arg0: i32) -> (i32, i32) {
    %c0_i32 = arith.constant 0 : i32
    %c0_i32_0 = arith.constant 0 : i32
    %c0_i32_1 = arith.constant 0 : i32
    return %c0_i32, %c0_i32_0 : i32, i32
  }
  func.func @transform_20(%arg0: i32) -> (i32, i32) {
    %c0_i32 = arith.constant 0 : i32
    %c0_i32_0 = arith.constant 0 : i32
    %c0_i32_1 = arith.constant 0 : i32
    return %c0_i32, %c0_i32_0 : i32, i32
  }
  func.func @transform_21(%arg0: i32) -> (i32, i32) {
    %c0_i32 = arith.constant 0 : i32
    %c0_i32_0 = arith.constant 0 : i32
    %c0_i32_1 = arith.constant 0 : i32
    return %c0_i32, %c0_i32_0 : i32, i32
  }
  func.func @transform_22(%arg0: i32) -> (i32, i32) {
    %c0_i32 = arith.constant 0 : i32
    %c0_i32_0 = arith.constant 0 : i32
    %c0_i32_1 = arith.constant 0 : i32
    return %c0_i32, %c0_i32_0 : i32, i32
  }
  func.func @transform_23(%arg0: i32) -> (i32, i32) {
    %c0_i32 = arith.constant 0 : i32
    %c0_i32_0 = arith.constant 0 : i32
    %c0_i32_1 = arith.constant 0 : i32
    return %c0_i32, %c0_i32_0 : i32, i32
  }
  func.func @transform_24(%arg0: i32) -> (i32, i32) {
    %c0_i32 = arith.constant 0 : i32
    %c0_i32_0 = arith.constant 0 : i32
    %c0_i32_1 = arith.constant 0 : i32
    return %c0_i32, %c0_i32_0 : i32, i32
  }
  func.func @transform_25(%arg0: i32) -> (i32, i32) {
    %c0_i32 = arith.constant 0 : i32
    %c0_i32_0 = arith.constant 0 : i32
    %c0_i32_1 = arith.constant 0 : i32
    return %c0_i32, %c0_i32_0 : i32, i32
  }
}

</mosaic_0001>

<bundles_post_ra>
// kernel: tpu_custom_call.1
= control target key start
LH: loop header
LB: loop body
LE: loop exit
PB: predicated region body
PF: predicated region fallthrough
CT: control target
= control target key end

     0   :  { %s2789_s0 = inlined_call_operand.vmem [shape: f32[2,6], index: 0, kind: input, shape index: {}]   ;;  %s2790_s1 = inlined_call_operand.vmem [shape: f32[6,384], index: 1, kind: input, shape index: {}]   ;;  %s2791_s2 = inlined_call_operand.vmem [shape: f32[1,384], index: 2, kind: input, shape index: {}]   ;;  %s2792_s3 = inlined_call_operand.vmem [shape: f32[16,24], index: 3, kind: input, shape index: {}]   ;;  %s2793_s4 = inlined_call_operand.vmem [shape: f32[16,1], index: 4, kind: input, shape index: {}]   ;;  %s2794_s5 = inlined_call_operand.vmem [shape: f32[8,48], index: 5, kind: input, shape index: {}]   ;;  %s2795_s6 = inlined_call_operand.vmem [shape: f32[8,1], index: 6, kind: input, shape index: {}]   ;;  %s2796_s7 = inlined_call_operand.hbm [shape: bf16[384,128], index: 7, kind: input, shape index: {}]   ;;  %s2797_s8 = inlined_call_operand.vmem [shape: f32[1,128], index: 8, kind: input, shape index: {}]   ;;  %s2798_s9 = inlined_call_operand.hbm [shape: bf16[128,384], index: 9, kind: input, shape index: {}]   ;;  %s2799_s10 = inlined_call_operand.vmem [shape: f32[1,384], index: 10, kind: input, shape index: {}]   ;;  %s2800_s11 = inlined_call_operand.vmem [shape: f32[16,24], index: 11, kind: input, shape index: {}]   ;;  %s2801_s12 = inlined_call_operand.vmem [shape: f32[16,1], index: 12, kind: input, shape index: {}]   ;;  %s2802_s13 = inlined_call_operand.vmem [shape: f32[16,48], index: 13, kind: input, shape index: {}]   ;;  %s2803_s14 = inlined_call_operand.vmem [shape: f32[16,1], index: 14, kind: input, shape index: {}]   ;;  %s2804_s15 = inlined_call_operand.vmem [shape: f32[16,48], index: 15, kind: input, shape index: {}]   ;;  %s2805_s16 = inlined_call_operand.vmem [shape: f32[16,1], index: 16, kind: input, shape index: {}]   ;;  %s2806_s17 = inlined_call_operand.vmem [shape: f32[16,48], index: 17, kind: input, shape index: {}]   ;;  %s2807_s18 = inlined_call_operand.vmem [shape: f32[16,1], index: 18, kind: input, shape index: {}]   ;;  %s2808_s19 = inlined_call_operand.vmem [shape: f32[8,16], index: 19, kind: input, shape index: {}]   ;;  %s2809_s20 = inlined_call_operand.vmem [shape: f32[8,1], index: 20, kind: input, shape index: {}]   ;;  %s2810_s21 = inlined_call_operand.vmem [shape: f32[16,8], index: 21, kind: input, shape index: {}]   ;;  %s2811_s22 = inlined_call_operand.vmem [shape: f32[16,1], index: 22, kind: input, shape index: {}]   ;;  %s2812_s23 = inlined_call_operand.vmem [shape: f32[8,16], index: 23, kind: input, shape index: {}]   ;;  %s2813_s24 = inlined_call_operand.vmem [shape: f32[8,1], index: 24, kind: input, shape index: {}]   ;;  %s2814_s25 = inlined_call_operand.hbm [shape: f32[2,384], index: 25, kind: output, shape index: {}]  }
   0x1   :  { %2824 = sst [smem:[#allocation16_spill]] %s2789_s0 }
   0x2   :  { %2825 = sst [smem:[#allocation17_spill]] %s2790_s1 }
   0x3   :  { %2826 = sst [smem:[#allocation18_spill]] %s2791_s2 }
   0x4   :  { %2827 = sst [smem:[#allocation19_spill]] %s2792_s3 }
   0x5   :  { %2828 = sst [smem:[#allocation20_spill]] %s2793_s4 }
   0x6   :  { %2829 = sst [smem:[#allocation21_spill]] %s2794_s5 }
   0x7   :  { %2830 = sst [smem:[#allocation22_spill]] %s2795_s6 }
   0x8   :  { %2831 = sst [smem:[#allocation23_spill]] %s2796_s7 }
   0x9   :  { %2832 = sst [smem:[#allocation24_spill]] %s2797_s8 }
   0xa   :  { %2833 = sst [smem:[#allocation25_spill]] %s2798_s9 }
   0xb   :  { %2834 = sst [smem:[#allocation26_spill]] %s2812_s23 }
   0xc   :  { %2835 = sst [smem:[#allocation27_spill]] %s2814_s25 }
   0xd   :  { %30 = vsyncpa [#allocation6], 0  ;;  %s2345_s29 = sld [smem:[#allocation0]]   ;;  %v125_v0 = vlaneseq  ;;  %s2193_s2 = smov [#allocation2]   ;;  %v2195_v1 = vmov 0.0  }
   0xe   :  { %s85_s6 = sshll.u32 %s2193_s2, 4  ;;  %s2194_s30 = smov [#allocation3]   ;;  %267 = vmatprep.mubr.f32.mxu0 %v2195_v1  ;;  %1898 = vmatprep.subr.mxu1 %v2195_v1  ;;  %s86_s6 = int_to_ptr.vmem [resolvable:$true] %s85_s6 }
   0xf   :  { %s2347_s7 = sshll.u32 %s2194_s30, 4  ;;  %v2352_v2 = vand.u32 127, %v125_v0  ;;  %s2836_s1 = sld [smem:[#allocation23_spill]]  ;;  %s103_s7 = int_to_ptr.vmem [resolvable:$true] %s2347_s7 }
  0x15   :  { %s2143_s8 = scalar_lea.hbm %s2836_s1, 3072 }
  0x16   :  { %p2144_p0 = scmp.ne.s32.totalorder %s2836_s1, %s2143_s8  ;;  %p2147_p1 = scmp.lt.u32.totalorder %s2143_s8, %s2836_s1 }
  0x18   :  { %p2149_p2 = pnand %p2147_p1, %p2144_p0 }
  0x1a   :  { %2152 = shalt.err (!%p2149_p2)  }
  0x1b   :  { %s2153_s5 = scalar_lea.vmem %s86_s6, 3072  ;;  %p2158_p4 = scmp.lt.s32.totalorder %s86_s6, %s86_s6 }
  0x1c   :  { %p2154_p3 = scmp.ne.s32.totalorder %s86_s6, %s2153_s5  ;;  %p2159_p5 = scmp.lt.s32.totalorder %s2153_s5, %s2153_s5 }
  0x1e   :  { %p2160_p6 = por %p2159_p5, %p2158_p4 }
  0x20   :  { %p2161_p7 = pnand %p2160_p6, %p2154_p3 }
  0x22   :  { %2164 = shalt.err (!%p2161_p7)  }
  0x23   :  { %88 = dma.hbm_to_vmem [thread:$0]  %s2836_s1, 3072, %s86_s6, [#allocation4]  ;;  %vm2196_vm0 = vmmov 0   ;;  %vm162_vm4 = vcmp.ge.s32.totalorder %v2352_v2, 2  ;;  %vm193_vm7 = vcmask 1045504   ;;  %vm189_vm8 = vcmask 48128  }
  0x24   :  { %1900 = vmatprep.mubr.msk.f32.mxu1 %vm2196_vm0, %v2195_v1  ;;  %s2197_s30 = smov 384   ;;  %s1779_s6 = sshll.u32 %s2345_s29, 26  ;;  %v2398_v7 = vshrl.u32 %v125_v0, 7  ;;  %v127_v15 = vadd.s32 128, %v2352_v2  ;;  %vm362_vm9 = vcmask 1040384   ;;  %vm365_vm10 = vcmask 1041408  }
  0x25   :  { %106 = sst [smem:[#allocation12]] %s2197_s30  ;;  %s1780_s3 = sadd.s32 134217728, %s1779_s6  ;;  %vm368_vm15 = vcmask 1042432   ;;  %v2208_v39 = vmov 0   ;;  %vm379_vm13 = vcmp.lt.s32.totalorder %v2352_v2, 1  ;;  %vm160_vm6 = vcmp.ge.s32.totalorder %v2352_v2, 1 }
  0x26   :  { %108 = sst [smem:[#allocation12 + $0x1]] %s2197_s30  ;;  %s2198_s26 = smov 3   ;;  %v176_v8 = vsub.s32 0, %v2398_v7  ;;  %v184_v9 = vsub.s32 2, %v2398_v7  ;;  %v180_v11 = vsub.s32 1, %v2398_v7  ;;  %v2413_v23 = vand.u32 127, %v127_v15  ;;  %2054 = vset.pattern.permute.xlu1 %v2208_v39  ;;  %2055 = vset.pattern.permute.xlu0 %v2208_v39  ;;  %vm2464_vm2 = vmpackc.low %vm368_vm15, %vm160_vm6 }
  0x27   :  { %110 = sst [smem:[#allocation12 + $0x2]] %s2198_s26  ;;  %s2199_s1 = smov 64   ;;  %vm152_vm12 = vcmp.lt.s32.totalorder %v2352_v2, 127  ;;  %vm1953_vm1 = vmpackc.low %vm160_vm6, %vm160_vm6 }
  0x28   :  { %112 = sst [smem:[#allocation12 + $0x3]] %s2199_s1  ;;  %s2200_s8 = smov 128   ;;  %vm163_vm14 = vcmp.ge.s32.totalorder %v2413_v23, 2  ;;  %vm161_vm3 = vcmp.ge.s32.totalorder %v2413_v23, 1  ;;  %vm153_vm5 = vcmp.lt.s32.totalorder %v2413_v23, 127  ;;  %vm1963_vm6 = vmpackc.low %vm152_vm12, %vm152_vm12 }
  0x29   :  { %114 = sst [smem:[#allocation12 + $0x4]] %s2200_s8  ;;  %s2819_s27 = smov 2   ;;  %vm1950_vm11 = vmpackc.low %vm161_vm3, %vm161_vm3 }
  0x2a   :  { %116 = sst [smem:[#allocation12 + $0x5]] %s2819_s27  ;;  %s2202_s4 = smov 192  }
  0x2b   :  { %118 = sst [smem:[#allocation12 + $0x6]] %s2202_s4  ;;  %s2821_s28 = smov 4  }
  0x2c   :  { %120 = sst [smem:[#allocation12 + $0x7]] %s2199_s1  ;;  %s2204_s9 = smov [#allocation4 + $0x1]  }
  0x2d   :  { %122 = sst [smem:[#allocation12 + $0x8]] %s2821_s28  ;;  %s2205_s29 = smov [#allocation11]  }
  0x2e   :  { %s2837_s2 = sld [smem:[#allocation25_spill]]  ;;  %s2206_s23 = smov 127  }
  0x2f   :  { %s2207_s25 = smov 1  }
  0x34   :  { %124 = dma.general %s2837_s2, 3072, %s103_s7, %s2204_s9, %s2205_s29, [#allocation12], %s1780_s3, 0  }
  0x35   :  { %s2838_s26 = sld [smem:[#allocation17_spill]]  ;;  %s2839_s28 = sld [smem:[#allocation16_spill]] }
  0x36   :  { %s2840_s27 = sld [smem:[#allocation18_spill]]  ;;  %s2841_s29 = sld [smem:[#allocation20_spill]] }
  0x37   :  { %s2846_s6 = sld [smem:[#allocation19_spill]]  ;;  %s2847_s7 = sld [smem:[#allocation22_spill]] }
  0x3b   :  { %v170_v3 = vld [vmem:[%s2838_s26 + $0x8] sm:$0x3f]  ;;  %v169_v4 = vld [vmem:[%s2838_s26] sm:$0x3f]  ;;  %v171_v6 = vld [vmem:[%s2838_s26 + $0x10] sm:$0x3f] }
  0x3c   :  { %v168_v5 = vld [vmem:[%s2839_s28] sm:$0x3]  ;;  %1781 = vmatprep.subr.msk.mxu0 %vm193_vm7, %v170_v3  ;;  %1899 = vmatpush3.msk.msra.mxu1 %vm193_vm7, %v171_v6  ;;  %v374_v40 = vld [vmem:[%s2841_s29 + $0x8] sm:$0xff]  ;;  %s2848_s28 = sld [smem:[#allocation21_spill]] }
  0x3d   :  { %1782 = vmatpush1.msk.msra.mxu0 %vm193_vm7, %v169_v4  ;;  %1901 = vmatmul.mubr.msk.f32.vlgmr.msra.gmra.mrb[0].mxu1 %vm189_vm8, %v168_v5  ;;  %v172_v10 = vld [vmem:[%s2840_s27] sm:$0x7]  ;;  %vm411_vm7 = vcmask 195584   ;;  %v372_v55 = vld [vmem:[%s2846_s6 + $0x8] sm:$0xff] }
  0x3e   :  { %1783 = vmatmul.mubr.msk.f32.vlgmr.msra.gmra.mrb[0].mxu0 %vm189_vm8, %v168_v5  ;;  %606 = vmatprep.mubr.f32.mxu1 %v2195_v1  ;;  %v177_v12 = vrot.slane %v172_v10, %v176_v8  ;;  %v185_v13 = vrot.slane %v172_v10, %v184_v9  ;;  %v181_v14 = vrot.slane %v172_v10, %v180_v11  ;;  %v373_v38 = vld [vmem:[%s2841_s29] sm:$0xff]  ;;  %vm2456_vm8 = vmpackc.low %vm368_vm15, %vm161_vm3 }
  0x3f   :  { %482 = vmatprep.mubr.f32.mxu0 %v2195_v1  ;;  %v371_v53 = vld [vmem:[%s2846_s6] sm:$0xff]  ;;  %vm1960_vm3 = vmpackc.low %vm153_vm5, %vm153_vm5 }
 0x110   :  { %v340_v17 = vpop.f32.mrb[0].mxu1 }
 0x111   :  { %v269_v16 = vpop.f32.mrb[0].mxu0  ;;  %v341_v20 = vadd.f32 %v340_v17, %v185_v13  ;;  %v1902_v21 = vpop.f32.mrb[1].mxu1 }
 0x112   :  { %v270_v18 = vadd.f32 %v269_v16, %v177_v12  ;;  %v271_v19 = vpop.f32.mrb[1].mxu0  ;;  %v500_v16 = vld [vmem:[%s2847_s7] sm:$0xff] }
 0x113   :  { %v272_v22 = vadd.f32 %v271_v19, %v181_v14  ;;  %v346_v25 = vmax.f32 %v341_v20, 0.0 }
 0x114   :  { %v344_v24 = vmax.f32 %v270_v18, 0.0 }
 0x115   :  { %v345_v26 = vmax.f32 %v272_v22, 0.0  ;;  %v358_v28 = vrot.slane %v346_v25, 6  ;;  %v1787_v29 = vrot.slane %v346_v25, 7 }
 0x116   :  { %v348_v27 = vrot.slane %v344_v24, 1 }
 0x117   :  { %v354_v30 = vrot.slane %v345_v26, 7 }
 0x118   :  { %v364_v31 = vsel %vm362_vm9, %v348_v27, %v345_v26 }
 0x119   :  { %v367_v32 = vsel %vm365_vm10, %v364_v31, %v1787_v29  ;;  %v363_v33 = vsel %vm362_vm9, %v344_v24, %v354_v30 }
 0x11a   :  { %v2425_v34 = vsel %vm368_vm15, %v367_v32, 0.0  ;;  %v366_v35 = vsel %vm365_vm10, %v363_v33, %v358_v28 }
 0x11b   :  { %390 = vrot.lane.b32.xlu1 %v2425_v34, %s2206_s23  ;;  %v2431_v36 = vsel %vm368_vm15, %v366_v35, 0.0 }
 0x11c   :  { %v2049_v37 = vpack.i.bf16 %v2425_v34, %v2431_v36 }
 0x11e   :  { %2050 = vrot.lane.b32.xlu0 %v2049_v37, %s2207_s25 }
 0x11f   :  { %403 = vperm.xlu1 %2054, %v373_v38  }
 0x122   :  { %388 = vrot.lane.b32.xlu0 %v2431_v36, %s2206_s23 }
 0x126   :  { %408 = vperm.xlu0 %2055, %v374_v40  }
 0x18d   :  { %v391_v51 = vpop.permute.xlu1 %390 }
 0x190   :  { %v2051_v41 = vpop.permute.xlu0 %2050 }
 0x191   :  { %v2053_v42 = vunpack.i.h.bf16 %v2051_v41  ;;  %v2052_v43 = vunpack.i.l.bf16 %v2051_v41 }
 0x193   :  { %v380_v44 = vsel %vm379_vm13, %v2052_v43, %v2053_v42  ;;  %v381_v45 = vsel %vm379_vm13, %v2053_v42, %v2052_v43 }
 0x194   :  { %v1943_v47 = vpack.c.bf16 %v367_v32, %v380_v44  ;;  %v1946_v48 = vpack.c.bf16 %v366_v35, %v381_v45  ;;  %v389_v49 = vpop.permute.xlu0 %388  ;;  %v499_v45 = vld [vmem:[%s2848_s28] sm:$0xff] }
 0x195   :  { %v394_v52 = vsel %vm152_vm12, %v391_v51, %v389_v49  ;;  %v393_v54 = vsel %vm152_vm12, %v389_v49, %v391_v51 }
 0x196   :  { %1945 = vmatprep.subr.msk.bf16.mxu0 %vm2456_vm8, %v1943_v47 }
 0x197   :  { %1948 = vmatpush1.bf16.msk.msra.mxu0 %vm2464_vm2, %v1946_v48 }
 0x198   :  { %1792 = vmatprep.subr.msk.mxu0 %vm153_vm5, %v394_v52 }
 0x19b   :  { %1793 = vmatpush1.msk.msra.mxu0 %vm152_vm12, %v393_v54 }
 0x19c   :  { %1794 = vmatmul.mubr.msk.f32.vlgmr.msra.gmra.mrb[2].mxu0 %vm411_vm7, %v371_v53 }
 0x19d   :  { %488 = vmatprep.mubr.f32.mxu0 %v2195_v1 }
 0x19e   :  { %v404_v57 = vpop.permute.xlu1 %403 }
 0x1a0   :  { %1795 = vmatmul.mubr.msk.f32.gmra.mrb[4].mxu0 %vm411_vm7, %v372_v55 }
 0x1a5   :  { %v409_v59 = vpop.permute.xlu0 %408 }
 0x26f   :  { %v484_v56 = vpop.f32.mrb[2].mxu0 }
 0x270   :  { %v486_v58 = vpop.f32.mrb[3].mxu0  ;;  %v485_v60 = vadd.f32 %v484_v56, %v404_v57 }
 0x271   :  { %v487_v61 = vadd.f32 %v486_v58, %v404_v57 }
 0x272   :  { %v495_v4 = vmax.f32 %v485_v60, 0.0 }
 0x273   :  { %v490_v62 = vpop.f32.mrb[4].mxu0  ;;  %v496_v6 = vmax.f32 %v487_v61, 0.0 }
 0x274   :  { %v491_v63 = vadd.f32 %v490_v62, %v409_v59  ;;  %v492_v0 = vpop.f32.mrb[5].mxu0 }
 0x275   :  { %v493_v3 = vadd.f32 %v492_v0, %v409_v59 }
 0x276   :  { %v497_v5 = vmax.f32 %v491_v63, 0.0 }
 0x277   :  { %v498_v10 = vmax.f32 %v493_v3, 0.0 }
 0x278   :  { %v1957_v12 = vpack.c.bf16 %v497_v5, %v495_v4  ;;  %v2066_v13 = vpack.i.bf16 %v497_v5, %v495_v4 }
 0x279   :  { %v2061_v14 = vpack.i.bf16 %v498_v10, %v496_v6  ;;  %v1955_v15 = vpack.c.bf16 %v498_v10, %v496_v6 }
 0x27a   :  { %2067 = vrot.lane.b32.xlu0 %v2066_v13, %s2206_s23  ;;  %2057 = vrot.lane.b32.xlu1 %v2066_v13, %s2207_s25 }
 0x27e   :  { %535 = vperm.xlu0 %2055, %v500_v16   ;;  %2062 = vrot.lane.b32.xlu1 %v2061_v14, %s2207_s25 }
 0x282   :  { %2072 = vrot.lane.b32.xlu1 %v2061_v14, %s2206_s23 }
 0x2ec   :  { %v2058_v17 = vpop.permute.xlu1 %2057  ;;  %v2068_v24 = vpop.permute.xlu0 %2067 }
 0x2ed   :  { %v2060_v19 = vunpack.i.h.bf16 %v2058_v17  ;;  %v2059_v20 = vunpack.i.l.bf16 %v2058_v17  ;;  %v2070_v32 = vunpack.i.h.bf16 %v2068_v24  ;;  %v2069_v33 = vunpack.i.l.bf16 %v2068_v24 }
 0x2f0   :  { %v2063_v18 = vpop.permute.xlu1 %2062 }
 0x2f1   :  { %v2065_v21 = vunpack.i.h.bf16 %v2063_v18  ;;  %v2064_v22 = vunpack.i.l.bf16 %v2063_v18 }
 0x2f3   :  { %v509_v25 = vsel %vm379_vm13, %v2059_v20, %v2064_v22  ;;  %v510_v26 = vsel %vm379_vm13, %v2060_v19, %v2065_v21  ;;  %v511_v27 = vsel %vm379_vm13, %v2064_v22, %v2059_v20  ;;  %v512_v28 = vsel %vm379_vm13, %v2065_v21, %v2060_v19 }
 0x2f4   :  { %v1949_v29 = vpack.c.bf16 %v510_v26, %v509_v25  ;;  %v1952_v30 = vpack.c.bf16 %v512_v28, %v511_v27  ;;  %v2073_v31 = vpop.permute.xlu1 %2072 }
 0x2f5   :  { %v2075_v35 = vunpack.i.h.bf16 %v2073_v31  ;;  %v2074_v37 = vunpack.i.l.bf16 %v2073_v31 }
 0x2f6   :  { %1951 = vmatprep.subr.msk.bf16.mxu1 %vm1950_vm11, %v1949_v29 }
 0x2f7   :  { %v528_v38 = vsel %vm152_vm12, %v2075_v35, %v2070_v32  ;;  %v527_v40 = vsel %vm152_vm12, %v2074_v37, %v2069_v33  ;;  %1954 = vmatpush1.bf16.msk.msra.mxu1 %vm1953_vm1, %v1952_v30  ;;  %v526_v41 = vsel %vm152_vm12, %v2070_v32, %v2075_v35  ;;  %v525_v42 = vsel %vm152_vm12, %v2069_v33, %v2074_v37 }
 0x2f8   :  { %1956 = vmatprep.subr.bf16.mxu1 %v1955_v15  ;;  %v1959_v43 = vpack.c.bf16 %v528_v38, %v527_v40  ;;  %v1962_v44 = vpack.c.bf16 %v526_v41, %v525_v42  ;;  %vm538_vm1 = vcmask 392192  }
 0x2fb   :  { %1958 = vmatpush1.bf16.msra.mxu1 %v1957_v12 }
 0x2fc   :  { %1961 = vmatprep.subr.msk.bf16.mxu1 %vm1960_vm3, %v1959_v43 }
 0x2fd   :  { %v536_v47 = vpop.permute.xlu0 %535 }
 0x2ff   :  { %1964 = vmatpush1.bf16.msk.msra.mxu1 %vm1963_vm6, %v1962_v44 }
 0x302   :  { %1804 = vmatmul.mubr.msk.f32.vlgmr.msra.gmra.mrb[2].mxu1 %vm538_vm1, %v499_v45 }
 0x3d5   :  { %v608_v48 = vpop.f32.mrb[2].mxu1 }
 0x3d6   :  { %v609_v49 = vadd.f32 %v608_v48, %v536_v47  ;;  %v610_v51 = vpop.f32.mrb[3].mxu1 }
 0x3d7   :  { %v611_v52 = vadd.f32 %v610_v51, %v536_v47 }
 0x3d8   :  { %v613_v53 = vadd.f32 %v609_v49, %v2431_v36 }
 0x3d9   :  { %v614_v54 = vadd.f32 %v611_v52, %v2425_v34 }
 0x3da   :  { %v616_v55 = vrot.slane %v613_v53, 1  ;;  %v618_v56 = vrot.slane %v613_v53, 2 }
 0x3db   :  { %v623_v57 = vrot.slane %v614_v54, 7  ;;  %v1806_v58 = vrot.slane %v614_v54, 9 }
 0x3dc   :  { %v630_v59 = vsel %vm362_vm9, %v616_v55, %v614_v54 }
 0x3dd   :  { %v2533_v60 = vsel %vm362_vm9, %v613_v53, %v623_v57  ;;  %v2536_v61 = vsel %vm362_vm9, %v618_v56, %v1806_v58 }
 0x3de   :  { %2187 = dma.done.wait [#allocation4], 3072 }
 0x3df   :  { %2188 = vsyncadd [#allocation4], 4294964224 }
 0x3e0   :  { %2189 = dma.done.wait [#allocation4 + $0x1], 3072 }
 0x3e1   :  { %2190 = vsyncadd [#allocation4 + $0x1], 4294964224  ;;  %1903 = vmatprep.subr.bf16.mxu1 %v2195_v1  ;;  %v641_v36 = vpack.c.bf16 %v630_v59, %v630_v59  ;;  %1919 = vmatprep.mubr.msk.bf16.mxu1 %vm2196_vm0, %v2195_v1  ;;  %v651_v34 = vld [vmem:[#allocation2 + $0x40] sm:$0xff]  ;;  %v652_v0 = vld [vmem:[#allocation2 + $0x48] sm:$0xff]  ;;  %v642_v28 = vpack.c.bf16 %v2536_v61, %v2536_v61  ;;  %v640_v30 = vpack.c.bf16 %v2533_v60, %v2533_v60  ;;  %s2849_s5 = sld [smem:[#allocation24_spill]]  ;;  %s2850_s1 = smov 2  }
 0x3e2   :  { %2081 = vset.pattern.permute.xlu1 %v2208_v39  ;;  %2082 = vset.pattern.permute.xlu0 %v2208_v39  ;;  %v643_v62 = vld [vmem:[#allocation2] sm:$0xff]  ;;  %v660_v3 = vld [vmem:[#allocation2 + $0x88] sm:$0xff]  ;;  %v653_v5 = vld [vmem:[#allocation2 + $0x50] sm:$0xff]  ;;  %vm2858_vm3 = vcmp.ge.s32.totalorder %v2413_v23, 4  ;;  %s2874_s30 = sld [smem:[#allocation26_spill]] }
 0x3e3   :  { %706 = vmatprep.mubr.bf16.mxu0 %v641_v36  ;;  %v659_v63 = vld [vmem:[#allocation2 + $0x80] sm:$0xff]  ;;  %1858 = vmatprep.subr.bf16.mxu0 %v651_v34  ;;  %v644_v4 = vld [vmem:[#allocation2 + $0x8] sm:$0xff]  ;;  %v661_v6 = vld [vmem:[#allocation2 + $0x90] sm:$0xff] }
 0x3e4   :  { %1904 = vmatpush3.bf16.msra.mxu1 %v659_v63  ;;  %1859 = vmatpush3.bf16.msra.mxu0 %v643_v62  ;;  %v645_v10 = vld [vmem:[#allocation2 + $0x10] sm:$0xff]  ;;  %v654_v12 = vld [vmem:[#allocation2 + $0x58] sm:$0xff]  ;;  %v655_v15 = vld [vmem:[#allocation2 + $0x60] sm:$0xff] }
 0x3e5   :  { %1905 = vmatprep.subr.bf16.mxu1 %v2195_v1  ;;  %1860 = vmatprep.subr.bf16.mxu0 %v652_v0  ;;  %v662_v13 = vld [vmem:[#allocation2 + $0x98] sm:$0xff]  ;;  %v663_v16 = vld [vmem:[#allocation2 + $0xa0] sm:$0xff]  ;;  %v656_v18 = vld [vmem:[#allocation2 + $0x68] sm:$0xff] }
 0x3e6   :  { %v646_v14 = vld [vmem:[#allocation2 + $0x18] sm:$0xff]  ;;  %v647_v17 = vld [vmem:[#allocation2 + $0x20] sm:$0xff]  ;;  %v664_v19 = vld [vmem:[#allocation2 + $0xa8] sm:$0xff] }
 0x3e7   :  { %v648_v20 = vld [vmem:[#allocation2 + $0x28] sm:$0xff]  ;;  %v657_v21 = vld [vmem:[#allocation2 + $0x70] sm:$0xff]  ;;  %v658_v25 = vld [vmem:[#allocation2 + $0x78] sm:$0xff] }
 0x3e8   :  { %1906 = vmatpush3.bf16.msra.mxu1 %v660_v3  ;;  %1861 = vmatpush3.bf16.msra.mxu0 %v644_v4  ;;  %v665_v22 = vld [vmem:[#allocation2 + $0xb0] sm:$0xff]  ;;  %v666_v26 = vld [vmem:[#allocation2 + $0xb8] sm:$0xff]  ;;  %v757_v29 = vld [vmem:[#allocation3 + $0x8] sm:$0xff] }
 0x3e9   :  { %1907 = vmatprep.subr.bf16.mxu1 %v2195_v1  ;;  %1862 = vmatprep.subr.bf16.mxu0 %v653_v5  ;;  %v649_v24 = vld [vmem:[#allocation2 + $0x30] sm:$0xff]  ;;  %v650_v27 = vld [vmem:[#allocation2 + $0x38] sm:$0xff]  ;;  %v756_v32 = vld [vmem:[#allocation3] sm:$0xff] }
 0x3ea   :  { %v758_v31 = vld [vmem:[#allocation3 + $0x10] sm:$0xff]  ;;  %v760_v33 = vld [vmem:[#allocation3 + $0x20] sm:$0xff]  ;;  %v761_v35 = vld [vmem:[#allocation3 + $0x28] sm:$0xff] }
 0x3eb   :  { %v759_v37 = vld [vmem:[#allocation3 + $0x18] sm:$0xff]  ;;  %v764_v40 = vld [vmem:[#allocation3 + $0x40] sm:$0xff]  ;;  %v762_v41 = vld [vmem:[#allocation3 + $0x30] sm:$0xff] }
 0x3ec   :  { %1908 = vmatpush3.bf16.msra.mxu1 %v661_v6  ;;  %1863 = vmatpush3.bf16.msra.mxu0 %v645_v10  ;;  %v763_v38 = vld [vmem:[#allocation3 + $0x38] sm:$0xff]  ;;  %v766_v42 = vld [vmem:[#allocation3 + $0x50] sm:$0xff]  ;;  %v765_v44 = vld [vmem:[#allocation3 + $0x48] sm:$0xff] }
 0x3ed   :  { %1909 = vmatprep.subr.bf16.mxu1 %v2195_v1  ;;  %1864 = vmatprep.subr.bf16.mxu0 %v654_v12  ;;  %v767_v43 = vld [vmem:[#allocation3 + $0x58] sm:$0xff]  ;;  %v770_v45 = vld [vmem:[#allocation3 + $0x70] sm:$0xff]  ;;  %v768_v47 = vld [vmem:[#allocation3 + $0x60] sm:$0xff] }
 0x3ee   :  { %v772_v48 = vld [vmem:[#allocation3 + $0x80] sm:$0xff]  ;;  %v771_v49 = vld [vmem:[#allocation3 + $0x78] sm:$0xff]  ;;  %v773_v51 = vld [vmem:[#allocation3 + $0x88] sm:$0xff] }
 0x3ef   :  { %v775_v52 = vld [vmem:[#allocation3 + $0x98] sm:$0xff]  ;;  %v774_v53 = vld [vmem:[#allocation3 + $0x90] sm:$0xff]  ;;  %v776_v54 = vld [vmem:[#allocation3 + $0xa0] sm:$0xff] }
 0x3f0   :  { %1910 = vmatpush3.bf16.msra.mxu1 %v662_v13  ;;  %1865 = vmatpush3.bf16.msra.mxu0 %v646_v14  ;;  %v778_v55 = vld [vmem:[#allocation3 + $0xb0] sm:$0xff]  ;;  %v777_v56 = vld [vmem:[#allocation3 + $0xa8] sm:$0xff]  ;;  %v779_v57 = vld [vmem:[#allocation3 + $0xb8] sm:$0xff] }
 0x3f1   :  { %1911 = vmatprep.subr.bf16.mxu1 %v2195_v1  ;;  %1866 = vmatprep.subr.bf16.mxu0 %v655_v15  ;;  %v1807_v36 = vld [vmem:[%s2849_s5] ss:$0 sm:$0xff]  ;;  %v900_v46 = vld [vmem:[%s2800_s11 + $0x8] sm:$0xff]  ;;  %s2210_s5 = smov 124   ;;  %vm1988_vm6 = vmpackc.low %vm2858_vm3, %vm2858_vm3 }
 0x3f2   :  { %v780_v12 = vld [vmem:[%s2799_s10] sm:$0x7] }
 0x3f3   :  { %v785_v13 = vrot.slane %v780_v12, %v176_v8  ;;  %v793_v14 = vrot.slane %v780_v12, %v184_v9  ;;  %v789_v15 = vrot.slane %v780_v12, %v180_v11  ;;  %v1019_v12 = vld [vmem:[%s2803_s14 + $0x8] sm:$0xff] }
 0x3f4   :  { %1912 = vmatpush3.bf16.msra.mxu1 %v663_v16  ;;  %1867 = vmatpush3.bf16.msra.mxu0 %v647_v17 }
 0x3f5   :  { %1913 = vmatprep.subr.bf16.mxu1 %v2195_v1  ;;  %1868 = vmatprep.subr.bf16.mxu0 %v656_v18 }
 0x3f8   :  { %1914 = vmatpush3.bf16.msra.mxu1 %v664_v19  ;;  %1869 = vmatpush3.bf16.msra.mxu0 %v648_v20 }
 0x3f9   :  { %1915 = vmatprep.subr.bf16.mxu1 %v2195_v1  ;;  %1870 = vmatprep.subr.bf16.mxu0 %v657_v21 }
 0x3fc   :  { %1916 = vmatpush3.bf16.msra.mxu1 %v665_v22  ;;  %1871 = vmatpush3.bf16.msra.mxu0 %v649_v24 }
 0x3fd   :  { %1917 = vmatprep.subr.bf16.mxu1 %v2195_v1  ;;  %1872 = vmatprep.subr.bf16.mxu0 %v658_v25 }
 0x400   :  { %1918 = vmatpush3.bf16.msra.mxu1 %v666_v26  ;;  %1873 = vmatpush3.bf16.msra.mxu0 %v650_v27 }
 0x401   :  { %1923 = vmatprep.subr.bf16.mxu1 %v2195_v1  ;;  %797 = vmatprep.subr.bf16.mxu0 %v757_v29 }
 0x403   :  { %1920 = vmatmul.mubr.bf16.vlgmr.msra.gmra.mrb[4].mxu1 %v642_v28  ;;  %707 = vmatmul.mubr.bf16.vlgmr.msra.gmra.mrb[8].mxu0 %v640_v30 }
 0x404   :  { %1924 = vmatpush3.bf16.msra.mxu1 %v758_v31  ;;  %798 = vmatpush1.bf16.msra.mxu0 %v756_v32 }
 0x405   :  { %1925 = vmatprep.subr.bf16.mxu1 %v2195_v1  ;;  %799 = vmatprep.subr.bf16.mxu0 %v760_v33 }
 0x406   :  { %829 = vmatprep.mubr.bf16.mxu0 %v2208_v39  ;;  %1939 = vmatprep.mubr.msk.bf16.mxu1 %vm2196_vm0, %v2195_v1  ;;  %v769_v39 = vld [vmem:[#allocation3 + $0x68] sm:$0xff]  ;;  %vm1028_vm0 = vcmp.lt.s32.totalorder %v2352_v2, 2 }
 0x408   :  { %1926 = vmatpush3.bf16.msra.mxu1 %v761_v35  ;;  %800 = vmatpush1.bf16.msra.mxu0 %v759_v37 }
 0x409   :  { %1927 = vmatprep.subr.bf16.mxu1 %v2195_v1  ;;  %801 = vmatprep.subr.bf16.mxu0 %v763_v38  ;;  %v901_v38 = vld [vmem:[%s2801_s12] sm:$0xff] }
 0x40c   :  { %1928 = vmatpush3.bf16.msra.mxu1 %v764_v40  ;;  %802 = vmatpush1.bf16.msra.mxu0 %v762_v41  ;;  %v902_v40 = vld [vmem:[%s2801_s12 + $0x8] sm:$0xff] }
 0x40d   :  { %1929 = vmatprep.subr.bf16.mxu1 %v2195_v1  ;;  %803 = vmatprep.subr.bf16.mxu0 %v766_v42 }
 0x410   :  { %1930 = vmatpush3.bf16.msra.mxu1 %v767_v43  ;;  %804 = vmatpush1.bf16.msra.mxu0 %v765_v44 }
 0x411   :  { %1931 = vmatprep.subr.bf16.mxu1 %v2195_v1  ;;  %805 = vmatprep.subr.bf16.mxu0 %v769_v39 }
 0x414   :  { %1932 = vmatpush3.bf16.msra.mxu1 %v770_v45  ;;  %806 = vmatpush1.bf16.msra.mxu0 %v768_v47 }
 0x415   :  { %1933 = vmatprep.subr.bf16.mxu1 %v2195_v1  ;;  %807 = vmatprep.subr.bf16.mxu0 %v772_v48 }
 0x418   :  { %808 = vmatpush1.bf16.msra.mxu0 %v771_v49  ;;  %1934 = vmatpush3.bf16.msra.mxu1 %v773_v51 }
 0x419   :  { %1935 = vmatprep.subr.bf16.mxu1 %v2195_v1  ;;  %809 = vmatprep.subr.bf16.mxu0 %v775_v52  ;;  %v899_v52 = vld [vmem:[%s2800_s11] sm:$0xff]  ;;  %s2209_s11 = smov 126  }
 0x41c   :  { %810 = vmatpush1.bf16.msra.mxu0 %v774_v53  ;;  %1936 = vmatpush3.bf16.msra.mxu1 %v776_v54 }
 0x41d   :  { %1937 = vmatprep.subr.bf16.mxu1 %v2195_v1  ;;  %811 = vmatprep.subr.bf16.mxu0 %v778_v55 }
 0x420   :  { %812 = vmatpush1.bf16.msra.mxu0 %v777_v56  ;;  %1938 = vmatpush3.bf16.msra.mxu1 %v779_v57 }
 0x4d6   :  { %v748_v58 = vpop.f32.mrb[4].mxu1  ;;  %v1874_v59 = vpop.f32.mrb[8].mxu0 }
 0x4d7   :  { %v1921_v60 = vpop.f32.mrb[5].mxu1  ;;  %v1875_v61 = vpop.f32.mrb[9].mxu0 }
 0x4d8   :  { %v751_v34 = vpop.f32.mrb[6].mxu1  ;;  %v1876_v62 = vadd.f32 %v1875_v61, %v1874_v59  ;;  %v1877_v63 = vpop.f32.mrb[10].mxu0 }
 0x4d9   :  { %v1922_v0 = vpop.f32.mrb[7].mxu1  ;;  %v1878_v3 = vpop.f32.mrb[11].mxu0 }
 0x4da   :  { %v709_v4 = vadd.f32 %v1876_v62, %v1807_v36 }
 0x4dc   :  { %v749_v5 = vadd.f32 %v748_v58, %v709_v4 }
 0x4de   :  { %v754_v6 = vmax.f32 %v749_v5, 0.0 }
 0x4e0   :  { %v755_v10 = vpack.c.bf16 %v754_v6, %v754_v6 }
 0x4e2   :  { %830 = vmatmul.mubr.bf16.vlgmr.msra.gmra.mrb[12].mxu0 %v755_v10  ;;  %1940 = vmatmul.mubr.bf16.vlgmr.msra.gmra.mrb[8].mxu1 %v755_v10  ;;  %v1018_v10 = vld [vmem:[%s2803_s14] sm:$0xff] }
 0x4e3   :  { %999 = vmatprep.mubr.f32.mxu0 %v2195_v1  ;;  %1142 = vmatprep.mubr.f32.mxu1 %v2195_v1 }
 0x5b5   :  { %v831_v16 = vpop.f32.mrb[12].mxu0  ;;  %v872_v17 = vpop.f32.mrb[8].mxu1 }
 0x5b6   :  { %v832_v18 = vadd.f32 %v831_v16, %v785_v13  ;;  %v873_v19 = vadd.f32 %v872_v17, %v793_v14  ;;  %v833_v20 = vpop.f32.mrb[13].mxu0  ;;  %v1941_v21 = vpop.f32.mrb[9].mxu1 }
 0x5b7   :  { %v834_v22 = vadd.f32 %v833_v20, %v789_v15  ;;  %v835_v24 = vpop.f32.mrb[14].mxu0  ;;  %v875_v25 = vpop.f32.mrb[10].mxu1 }
 0x5b8   :  { %v879_v26 = vrot.slane %v832_v18, 1  ;;  %v1809_v27 = vrot.slane %v873_v19, 7  ;;  %v836_v28 = vpop.f32.mrb[15].mxu0  ;;  %v1942_v29 = vpop.f32.mrb[11].mxu1  ;;  %v889_v30 = vrot.slane %v873_v19, 6 }
 0x5b9   :  { %v885_v8 = vrot.slane %v834_v22, 7 }
 0x5ba   :  { %v894_v9 = vsel %vm362_vm9, %v879_v26, %v834_v22 }
 0x5bb   :  { %v896_v31 = vsel %vm365_vm10, %v894_v9, %v1809_v27  ;;  %v893_v11 = vsel %vm362_vm9, %v832_v18, %v885_v8 }
 0x5bc   :  { %v2583_v32 = vsel %vm368_vm15, %v896_v31, 0.0  ;;  %v895_v33 = vsel %vm365_vm10, %v893_v11, %v889_v30  ;;  %vm2851_vm10 = vcmp.lt.s32.totalorder %v2352_v2, 126 }
 0x5bd   :  { %913 = vrot.lane.b32.xlu1 %v2583_v32, %s2206_s23  ;;  %v2589_v35 = vsel %vm368_vm15, %v895_v33, 0.0  ;;  %vm2852_vm11 = vmmov %vm2851_vm10 }
 0x5be   :  { %v2076_v37 = vpack.i.bf16 %v2583_v32, %v2589_v35 }
 0x5c0   :  { %2077 = vrot.lane.b32.xlu0 %v2076_v37, %s2207_s25 }
 0x5c1   :  { %921 = vperm.xlu1 %2081, %v901_v38  }
 0x5c4   :  { %911 = vrot.lane.b32.xlu0 %v2589_v35, %s2206_s23  ;;  %s2212_s23 = smov 120  }
 0x5c8   :  { %926 = vperm.xlu0 %2082, %v902_v40   ;;  %v1016_v40 = vld [vmem:[%s2802_s13] sm:$0xff] }
 0x62f   :  { %v914_v49 = vpop.permute.xlu1 %913 }
 0x632   :  { %v2078_v41 = vpop.permute.xlu0 %2077 }
 0x633   :  { %v2080_v42 = vunpack.i.h.bf16 %v2078_v41  ;;  %v2079_v43 = vunpack.i.l.bf16 %v2078_v41  ;;  %v1017_v41 = vld [vmem:[%s2802_s13 + $0x8] sm:$0xff]  ;;  %s2857_s13 = smov 4  }
 0x635   :  { %v907_v44 = vsel %vm379_vm13, %v2079_v43, %v2080_v42  ;;  %v908_v39 = vsel %vm379_vm13, %v2080_v42, %v2079_v43 }
 0x636   :  { %v1968_v45 = vpack.c.bf16 %v895_v33, %v908_v39  ;;  %v912_v47 = vpop.permute.xlu0 %911  ;;  %v1965_v48 = vpack.c.bf16 %v896_v31, %v907_v44 }
 0x637   :  { %v916_v51 = vsel %vm152_vm12, %v914_v49, %v912_v47  ;;  %v915_v53 = vsel %vm152_vm12, %v912_v47, %v914_v49 }
 0x638   :  { %1967 = vmatprep.subr.msk.bf16.mxu0 %vm2456_vm8, %v1965_v48  ;;  %vm1171_vm8 = vcmp.lt.s32.totalorder %v2352_v2, 4 }
 0x639   :  { %1970 = vmatpush1.bf16.msk.msra.mxu0 %vm2464_vm2, %v1968_v45  ;;  %vm1972_vm2 = vmpackc.low %vm163_vm14, %vm163_vm14 }
 0x63a   :  { %1814 = vmatprep.subr.msk.mxu0 %vm153_vm5, %v916_v51  ;;  %vm1975_vm5 = vmpackc.low %vm162_vm4, %vm162_vm4 }
 0x63b   :  { %vm2854_vm14 = vmmov %vm2851_vm10 }
 0x63c   :  { %vm2855_vm4 = vmmov %vm2851_vm10 }
 0x63d   :  { %1815 = vmatpush1.msk.msra.mxu0 %vm152_vm12, %v915_v53  ;;  %vm2853_vm12 = vcmp.lt.s32.totalorder %v2413_v23, 126  ;;  %vm2856_vm15 = vmmov %vm2855_vm4 }
 0x63e   :  { %1816 = vmatmul.mubr.msk.f32.vlgmr.msra.gmra.mrb[6].mxu0 %vm411_vm7, %v899_v52  ;;  %vm1982_vm13 = vmpackc.low %vm2853_vm12, %vm2853_vm12 }
 0x63f   :  { %1005 = vmatprep.mubr.f32.mxu0 %v2195_v1 }
 0x640   :  { %v922_v50 = vpop.permute.xlu1 %921 }
 0x642   :  { %1817 = vmatmul.mubr.msk.f32.gmra.mrb[16].mxu0 %vm411_vm7, %v900_v46  ;;  %vm1985_vm7 = vmpackc.low %vm2856_vm15, %vm2856_vm15 }
 0x643   :  { %1285 = vmatprep.mubr.f32.mxu0 %v2195_v1 }
 0x647   :  { %v927_v56 = vpop.permute.xlu0 %926 }
 0x711   :  { %v1001_v54 = vpop.f32.mrb[6].mxu0 }
 0x712   :  { %v1003_v55 = vpop.f32.mrb[7].mxu0  ;;  %v1002_v57 = vadd.f32 %v1001_v54, %v922_v50 }
 0x713   :  { %v1004_v58 = vadd.f32 %v1003_v55, %v922_v50 }
 0x714   :  { %v1012_v34 = vmax.f32 %v1002_v57, 0.0 }
 0x715   :  { %v1007_v59 = vpop.f32.mrb[16].mxu0  ;;  %v1013_v63 = vmax.f32 %v1004_v58, 0.0 }
 0x716   :  { %v1008_v60 = vadd.f32 %v1007_v59, %v927_v56  ;;  %v1009_v61 = vpop.f32.mrb[17].mxu0  ;;  %v1161_v59 = vld [vmem:[%s2805_s16] sm:$0xff] }
 0x717   :  { %v1010_v36 = vadd.f32 %v1009_v61, %v927_v56 }
 0x718   :  { %v1014_v62 = vmax.f32 %v1008_v60, 0.0  ;;  %v1162_v60 = vld [vmem:[%s2805_s16 + $0x8] sm:$0xff]  ;;  %s2214_s16 = smov [#allocation5]  }
 0x719   :  { %v1015_v0 = vmax.f32 %v1010_v36, 0.0  ;;  %s1758_s6 = sshll.u32 %s2214_s16, 4  ;;  %s1759_s6 = int_to_ptr.vmem [resolvable:$true] %s1758_s6 }
 0x71a   :  { %v1979_v3 = vpack.c.bf16 %v1014_v62, %v1012_v34  ;;  %v2093_v4 = vpack.i.bf16 %v1014_v62, %v1012_v34  ;;  %s2165_s26 = scalar_lea.vmem %s1759_s6, 96  ;;  %p2170_p9 = scmp.lt.s32.totalorder %s1759_s6, %s1759_s6 }
 0x71b   :  { %v2088_v5 = vpack.i.bf16 %v1015_v0, %v1013_v63  ;;  %v1977_v6 = vpack.c.bf16 %v1015_v0, %v1013_v63  ;;  %p2166_p8 = scmp.ne.s32.totalorder %s1759_s6, %s2165_s26  ;;  %p2171_p10 = scmp.lt.s32.totalorder %s2165_s26, %s2165_s26 }
 0x71c   :  { %2094 = vrot.lane.b32.xlu0 %v2093_v4, %s2209_s11  ;;  %2084 = vrot.lane.b32.xlu1 %v2093_v4, %s2850_s1 }
 0x71d   :  { %p2172_p11 = por %p2171_p10, %p2170_p9 }
 0x71f   :  { %p2173_p12 = pnand %p2172_p11, %p2166_p8 }
 0x720   :  { %1064 = vperm.xlu0 %2082, %v1018_v10   ;;  %2089 = vrot.lane.b32.xlu1 %v2088_v5, %s2850_s1 }
 0x724   :  { %2099 = vrot.lane.b32.xlu1 %v2088_v5, %s2209_s11 }
 0x728   :  { %1069 = vperm.xlu1 %2081, %v1019_v12  }
 0x78e   :  { %v2085_v13 = vpop.permute.xlu1 %2084  ;;  %v2095_v19 = vpop.permute.xlu0 %2094 }
 0x78f   :  { %v2087_v15 = vunpack.i.h.bf16 %v2085_v13  ;;  %v2086_v16 = vunpack.i.l.bf16 %v2085_v13  ;;  %v2097_v28 = vunpack.i.h.bf16 %v2095_v19  ;;  %v2096_v29 = vunpack.i.l.bf16 %v2095_v19 }
 0x792   :  { %v2090_v14 = vpop.permute.xlu1 %2089 }
 0x793   :  { %v2092_v17 = vunpack.i.h.bf16 %v2090_v14  ;;  %v2091_v18 = vunpack.i.l.bf16 %v2090_v14 }
 0x795   :  { %v1029_v20 = vsel %vm1028_vm0, %v2086_v16, %v2091_v18  ;;  %v1030_v21 = vsel %vm1028_vm0, %v2087_v15, %v2092_v17  ;;  %v1031_v22 = vsel %vm1028_vm0, %v2091_v18, %v2086_v16  ;;  %v1032_v24 = vsel %vm1028_vm0, %v2092_v17, %v2087_v15 }
 0x796   :  { %v1971_v25 = vpack.c.bf16 %v1030_v21, %v1029_v20  ;;  %v1974_v26 = vpack.c.bf16 %v1032_v24, %v1031_v22  ;;  %v2100_v27 = vpop.permute.xlu1 %2099  ;;  %vm2859_vm0 = vcmp.ge.s32.totalorder %v2352_v2, 4 }
 0x797   :  { %v2102_v8 = vunpack.i.h.bf16 %v2100_v27  ;;  %v2101_v30 = vunpack.i.l.bf16 %v2100_v27  ;;  %v1160_v27 = vld [vmem:[%s2804_s15 + $0x8] sm:$0xff] }
 0x798   :  { %1973 = vmatprep.subr.msk.bf16.mxu1 %vm1972_vm2, %v1971_v25  ;;  %vm1991_vm2 = vmpackc.low %vm2859_vm0, %vm2859_vm0 }
 0x799   :  { %v1053_v9 = vsel %vm2851_vm10, %v2102_v8, %v2097_v28  ;;  %v1052_v31 = vsel %vm2852_vm11, %v2101_v30, %v2096_v29  ;;  %1976 = vmatpush1.bf16.msk.msra.mxu1 %vm1975_vm5, %v1974_v26  ;;  %v1051_v11 = vsel %vm2854_vm14, %v2097_v28, %v2102_v8  ;;  %v1050_v33 = vsel %vm2855_vm4, %v2096_v29, %v2101_v30  ;;  %v1159_v26 = vld [vmem:[%s2804_s15] sm:$0xff]  ;;  %s2211_s15 = smov 8  }
 0x79a   :  { %1978 = vmatprep.subr.bf16.mxu1 %v1977_v6  ;;  %v1981_v37 = vpack.c.bf16 %v1053_v9, %v1052_v31  ;;  %v1984_v38 = vpack.c.bf16 %v1051_v11, %v1050_v33  ;;  %vm2860_vm5 = vcmp.lt.s32.totalorder %v2352_v2, 124  ;;  %vm2862_vm11 = vcmp.lt.s32.totalorder %v2413_v23, 124 }
 0x79b   :  { %vm2861_vm10 = vmmov %vm2860_vm5 }
 0x79c   :  { %vm1998_vm12 = vmpackc.low %vm2862_vm11, %vm2862_vm11 }
 0x79d   :  { %1980 = vmatpush1.bf16.msra.mxu1 %v1979_v3  ;;  %vm2864_vm14 = vmmov %vm2860_vm5 }
 0x79e   :  { %1983 = vmatprep.subr.msk.bf16.mxu1 %vm1982_vm13, %v1981_v37  ;;  %vm2863_vm13 = vmmov %vm2860_vm5 }
 0x79f   :  { %v1065_v44 = vpop.permute.xlu0 %1064  ;;  %vm2865_vm4 = vmmov %vm2860_vm5 }
 0x7a0   :  { %vm2001_vm15 = vmpackc.low %vm2865_vm4, %vm2865_vm4 }
 0x7a1   :  { %1986 = vmatpush1.bf16.msk.msra.mxu1 %vm1985_vm7, %v1984_v38  ;;  %vm1314_vm7 = vcmp.lt.s32.totalorder %v2352_v2, 8 }
 0x7a4   :  { %1826 = vmatmul.mubr.msk.f32.vlgmr.msra.gmra.mrb[12].mxu1 %vm538_vm1, %v1016_v40 }
 0x7a5   :  { %1148 = vmatprep.mubr.f32.mxu1 %v2195_v1 }
 0x7a7   :  { %v1070_v45 = vpop.permute.xlu1 %1069 }
 0x7a8   :  { %1827 = vmatmul.mubr.msk.f32.gmra.mrb[14].mxu1 %vm538_vm1, %v1017_v41 }
 0x7a9   :  { %1428 = vmatprep.mubr.f32.mxu1 %v2195_v1 }
 0x877   :  { %v1144_v42 = vpop.f32.mrb[12].mxu1 }
 0x878   :  { %v1146_v43 = vpop.f32.mrb[13].mxu1  ;;  %v1145_v39 = vadd.f32 %v1144_v42, %v1065_v44 }
 0x879   :  { %v1147_v47 = vadd.f32 %v1146_v43, %v1065_v44 }
 0x87a   :  { %v1155_v53 = vmax.f32 %v1145_v39, 0.0 }
 0x87b   :  { %v1150_v48 = vpop.f32.mrb[14].mxu1  ;;  %v1156_v50 = vmax.f32 %v1147_v47, 0.0 }
 0x87c   :  { %v1151_v49 = vadd.f32 %v1150_v48, %v1070_v45  ;;  %v1152_v51 = vpop.f32.mrb[15].mxu1  ;;  %v1304_v48 = vld [vmem:[%s2807_s18] sm:$0xff] }
 0x87d   :  { %v1153_v52 = vadd.f32 %v1152_v51, %v1070_v45  ;;  %v1446_v51 = vld [vmem:[%s2809_s20] sm:$0xff] }
 0x87e   :  { %v1157_v46 = vmax.f32 %v1151_v49, 0.0  ;;  %v1305_v49 = vld [vmem:[%s2807_s18 + $0x8] sm:$0xff] }
 0x87f   :  { %v1158_v54 = vmax.f32 %v1153_v52, 0.0  ;;  %v1531_v52 = vld [vmem:[%s2811_s22] sm:$0xff] }
 0x880   :  { %v1995_v55 = vpack.c.bf16 %v1157_v46, %v1155_v53  ;;  %v2103_v56 = vpack.i.bf16 %v1157_v46, %v1155_v53  ;;  %v1532_v53 = vld [vmem:[%s2811_s22 + $0x8] sm:$0xff]  ;;  %v1632_v46 = vld [vmem:[%s2813_s24] sm:$0xff] }
 0x881   :  { %v2108_v57 = vpack.i.bf16 %v1158_v54, %v1156_v50  ;;  %v1993_v58 = vpack.c.bf16 %v1158_v54, %v1156_v50 }
 0x882   :  { %2104 = vrot.lane.b32.xlu0 %v2103_v56, %s2857_s13 }
 0x883   :  { %2109 = vrot.lane.b32.xlu1 %v2108_v57, %s2857_s13 }
 0x886   :  { %2114 = vrot.lane.b32.xlu0 %v2103_v56, %s2210_s5 }
 0x887   :  { %2119 = vrot.lane.b32.xlu1 %v2108_v57, %s2210_s5 }
 0x88a   :  { %1207 = vperm.xlu0 %2082, %v1161_v59  }
 0x88b   :  { %1212 = vperm.xlu1 %2081, %v1162_v60  }
 0x8f4   :  { %v2105_v61 = vpop.permute.xlu0 %2104 }
 0x8f5   :  { %v2107_v36 = vunpack.i.h.bf16 %v2105_v61  ;;  %v2106_v34 = vunpack.i.l.bf16 %v2105_v61  ;;  %v2110_v62 = vpop.permute.xlu1 %2109 }
 0x8f6   :  { %v2112_v63 = vunpack.i.h.bf16 %v2110_v62  ;;  %v2111_v0 = vunpack.i.l.bf16 %v2110_v62 }
 0x8f8   :  { %v1172_v3 = vsel %vm1171_vm8, %v2106_v34, %v2111_v0  ;;  %v1173_v4 = vsel %vm1171_vm8, %v2107_v36, %v2112_v63  ;;  %v1174_v5 = vsel %vm1171_vm8, %v2111_v0, %v2106_v34  ;;  %v1175_v6 = vsel %vm1171_vm8, %v2112_v63, %v2107_v36  ;;  %v2115_v10 = vpop.permute.xlu0 %2114 }
 0x8f9   :  { %v1987_v12 = vpack.c.bf16 %v1173_v4, %v1172_v3  ;;  %v1990_v13 = vpack.c.bf16 %v1175_v6, %v1174_v5  ;;  %v2117_v14 = vunpack.i.h.bf16 %v2115_v10  ;;  %v2116_v15 = vunpack.i.l.bf16 %v2115_v10  ;;  %v2120_v16 = vpop.permute.xlu1 %2119 }
 0x8fa   :  { %v2122_v17 = vunpack.i.h.bf16 %v2120_v16  ;;  %v2121_v18 = vunpack.i.l.bf16 %v2120_v16  ;;  %vm2866_vm8 = vcmp.ge.s32.totalorder %v2413_v23, 8 }
 0x8fb   :  { %1989 = vmatprep.subr.msk.bf16.mxu0 %vm1988_vm6, %v1987_v12  ;;  %vm2004_vm3 = vmpackc.low %vm2866_vm8, %vm2866_vm8  ;;  %vm2867_vm6 = vcmp.ge.s32.totalorder %v2352_v2, 8 }
 0x8fc   :  { %v1195_v19 = vsel %vm2860_vm5, %v2121_v18, %v2116_v15  ;;  %v1196_v20 = vsel %vm2861_vm10, %v2122_v17, %v2117_v14  ;;  %1992 = vmatpush1.bf16.msk.msra.mxu0 %vm1991_vm2, %v1990_v13  ;;  %v1193_v21 = vsel %vm2863_vm13, %v2116_v15, %v2121_v18  ;;  %v1194_v22 = vsel %vm2864_vm14, %v2117_v14, %v2122_v17  ;;  %vm2007_vm0 = vmpackc.low %vm2867_vm6, %vm2867_vm6  ;;  %v1303_v17 = vld [vmem:[%s2806_s17 + $0x8] sm:$0xff] }
 0x8fd   :  { %1994 = vmatprep.subr.bf16.mxu0 %v1993_v58  ;;  %v1997_v24 = vpack.c.bf16 %v1196_v20, %v1195_v19  ;;  %v2000_v25 = vpack.c.bf16 %v1194_v22, %v1193_v21  ;;  %vm2868_vm2 = vcmp.lt.s32.totalorder %v2352_v2, 120  ;;  %vm2870_vm10 = vcmp.lt.s32.totalorder %v2413_v23, 120  ;;  %v1302_v23 = vld [vmem:[%s2806_s17] sm:$0xff] }
 0x8fe   :  { %vm2869_vm5 = vmmov %vm2868_vm2 }
 0x8ff   :  { %vm2014_vm11 = vmpackc.low %vm2870_vm10, %vm2870_vm10 }
 0x900   :  { %1996 = vmatpush1.bf16.msra.mxu0 %v1995_v55  ;;  %vm2872_vm13 = vmmov %vm2868_vm2 }
 0x901   :  { %1999 = vmatprep.subr.msk.bf16.mxu0 %vm1998_vm12, %v1997_v24  ;;  %vm2871_vm12 = vmmov %vm2868_vm2 }
 0x902   :  { %vm2873_vm14 = vmmov %vm2868_vm2 }
 0x903   :  { %vm2017_vm4 = vmpackc.low %vm2873_vm14, %vm2873_vm14 }
 0x904   :  { %2002 = vmatpush1.bf16.msk.msra.mxu0 %vm2001_vm15, %v2000_v25  ;;  %vm1543_vm15 = vcmask 64512  }
 0x907   :  { %1836 = vmatmul.mubr.msk.f32.vlgmr.msra.gmra.mrb[18].mxu0 %vm538_vm1, %v1159_v26 }
 0x908   :  { %1291 = vmatprep.mubr.f32.mxu0 %v2195_v1 }
 0x909   :  { %v1208_v8 = vpop.permute.xlu0 %1207 }
 0x90a   :  { %v1213_v9 = vpop.permute.xlu1 %1212 }
 0x90b   :  { %1837 = vmatmul.mubr.msk.f32.gmra.mrb[20].mxu0 %vm538_vm1, %v1160_v27 }
 0x90c   :  { %1520 = vmatprep.mubr.f32.mxu0 %v2195_v1 }
 0x9da   :  { %v1287_v28 = vpop.f32.mrb[18].mxu0 }
 0x9db   :  { %v1289_v29 = vpop.f32.mrb[19].mxu0  ;;  %v1288_v30 = vadd.f32 %v1287_v28, %v1208_v8 }
 0x9dc   :  { %v1290_v31 = vadd.f32 %v1289_v29, %v1208_v8 }
 0x9dd   :  { %v1298_v40 = vmax.f32 %v1288_v30, 0.0 }
 0x9de   :  { %v1293_v11 = vpop.f32.mrb[20].mxu0  ;;  %v1299_v42 = vmax.f32 %v1290_v31, 0.0 }
 0x9df   :  { %v1294_v33 = vadd.f32 %v1293_v11, %v1213_v9  ;;  %v1295_v37 = vpop.f32.mrb[21].mxu0  ;;  %v1445_v11 = vld [vmem:[%s2808_s19] sm:$0xff] }
 0x9e0   :  { %v1296_v38 = vadd.f32 %v1295_v37, %v1213_v9 }
 0x9e1   :  { %v1300_v41 = vmax.f32 %v1294_v33, 0.0 }
 0x9e2   :  { %v1301_v43 = vmax.f32 %v1296_v38, 0.0 }
 0x9e3   :  { %v2011_v44 = vpack.c.bf16 %v1300_v41, %v1298_v40  ;;  %v2123_v39 = vpack.i.bf16 %v1300_v41, %v1298_v40 }
 0x9e4   :  { %v2128_v45 = vpack.i.bf16 %v1301_v43, %v1299_v42  ;;  %v2009_v47 = vpack.c.bf16 %v1301_v43, %v1299_v42 }
 0x9e5   :  { %2124 = vrot.lane.b32.xlu0 %v2123_v39, %s2211_s15 }
 0x9e6   :  { %2129 = vrot.lane.b32.xlu1 %v2128_v45, %s2211_s15 }
 0x9e9   :  { %2134 = vrot.lane.b32.xlu0 %v2123_v39, %s2212_s23  ;;  %v1530_v39 = vld [vmem:[%s2810_s21 + $0x8] sm:$0xff] }
 0x9ea   :  { %2139 = vrot.lane.b32.xlu1 %v2128_v45, %s2212_s23 }
 0x9ed   :  { %1350 = vperm.xlu0 %2082, %v1304_v48  }
 0x9ee   :  { %1355 = vperm.xlu1 %2081, %v1305_v49  }
 0x9f1   :  { %1449 = vperm.xlu0 %2082, %v1446_v51  }
 0x9f2   :  { %1535 = vperm.xlu1 %2081, %v1531_v52  }
 0x9f5   :  { %1540 = vperm.xlu0 %2082, %v1532_v53  }
 0x9f6   :  { %1635 = vperm.xlu1 %2081, %v1632_v46  }
 0xa57   :  { %v2125_v50 = vpop.permute.xlu0 %2124 }
 0xa58   :  { %v2127_v54 = vunpack.i.h.bf16 %v2125_v50  ;;  %v2126_v55 = vunpack.i.l.bf16 %v2125_v50  ;;  %v2130_v56 = vpop.permute.xlu1 %2129 }
 0xa59   :  { %v2132_v57 = vunpack.i.h.bf16 %v2130_v56  ;;  %v2131_v58 = vunpack.i.l.bf16 %v2130_v56 }
 0xa5b   :  { %v1315_v59 = vsel %vm1314_vm7, %v2126_v55, %v2131_v58  ;;  %v1316_v60 = vsel %vm1314_vm7, %v2127_v54, %v2132_v57  ;;  %v1317_v61 = vsel %vm1314_vm7, %v2131_v58, %v2126_v55  ;;  %v1318_v36 = vsel %vm1314_vm7, %v2132_v57, %v2127_v54  ;;  %v2135_v34 = vpop.permute.xlu0 %2134  ;;  %v1631_v58 = vld [vmem:[%s2874_s30] sm:$0xff] }
 0xa5c   :  { %v2003_v62 = vpack.c.bf16 %v1316_v60, %v1315_v59  ;;  %v2006_v63 = vpack.c.bf16 %v1318_v36, %v1317_v61  ;;  %v2137_v0 = vunpack.i.h.bf16 %v2135_v34  ;;  %v2136_v3 = vunpack.i.l.bf16 %v2135_v34  ;;  %v2140_v4 = vpop.permute.xlu1 %2139 }
 0xa5d   :  { %v2142_v5 = vunpack.i.h.bf16 %v2140_v4  ;;  %v2141_v6 = vunpack.i.l.bf16 %v2140_v4  ;;  %v2213_v59 = vmov 1983009808  }
 0xa5e   :  { %2005 = vmatprep.subr.msk.bf16.mxu1 %vm2004_vm3, %v2003_v62  ;;  %v1736_v60 = vunpack.c.l.s4 %v2213_v59 }
 0xa5f   :  { %v1338_v10 = vsel %vm2868_vm2, %v2141_v6, %v2136_v3  ;;  %v1339_v12 = vsel %vm2869_vm5, %v2142_v5, %v2137_v0  ;;  %2008 = vmatpush1.bf16.msk.msra.mxu1 %vm2007_vm0, %v2006_v63  ;;  %v1336_v13 = vsel %vm2871_vm12, %v2136_v3, %v2141_v6  ;;  %v1337_v14 = vsel %vm2872_vm13, %v2137_v0, %v2142_v5 }
 0xa60   :  { %2010 = vmatprep.subr.bf16.mxu1 %v2009_v47  ;;  %v2013_v15 = vpack.c.bf16 %v1339_v12, %v1338_v10  ;;  %v2016_v16 = vpack.c.bf16 %v1337_v14, %v1336_v13  ;;  %v1737_v3 = vunpack.c.0.s8 %v1736_v60 }
 0xa62   :  { %v1740_v14 = vsub.s32 %v1737_v3, %v2398_v7 }
 0xa63   :  { %2012 = vmatpush1.bf16.msra.mxu1 %v2011_v44  ;;  %v1529_v44 = vld [vmem:[%s2810_s21] sm:$0xff] }
 0xa64   :  { %2015 = vmatprep.subr.msk.bf16.mxu1 %vm2014_vm11, %v2013_v15 }
 0xa67   :  { %2018 = vmatpush1.bf16.msk.msra.mxu1 %vm2017_vm4, %v2016_v16 }
 0xa6a   :  { %1846 = vmatmul.mubr.msk.f32.vlgmr.msra.gmra.mrb[16].mxu1 %vm538_vm1, %v1302_v23 }
 0xa6b   :  { %1434 = vmatprep.mubr.f32.mxu1 %v2195_v1 }
 0xa6c   :  { %v1351_v19 = vpop.permute.xlu0 %1350 }
 0xa6d   :  { %v1356_v21 = vpop.permute.xlu1 %1355 }
 0xa6e   :  { %1847 = vmatmul.mubr.msk.f32.gmra.mrb[18].mxu1 %vm538_vm1, %v1303_v17  ;;  %vm1452_vm1 = vcmask 130048  }
 0xa6f   :  { %1705 = vmatprep.mubr.f32.mxu1 %v2195_v1 }
 0xa70   :  { %v1450_v33 = vpop.permute.xlu0 %1449 }
 0xb3d   :  { %v1430_v2 = vpop.f32.mrb[16].mxu1 }
 0xb3e   :  { %v1432_v18 = vpop.f32.mrb[17].mxu1  ;;  %v1431_v20 = vadd.f32 %v1430_v2, %v1351_v19 }
 0xb3f   :  { %v1433_v22 = vadd.f32 %v1432_v18, %v1351_v19 }
 0xb40   :  { %v1441_v28 = vmax.f32 %v1431_v20, 0.0 }
 0xb41   :  { %v1436_v24 = vpop.f32.mrb[18].mxu1  ;;  %v1442_v8 = vmax.f32 %v1433_v22, 0.0 }
 0xb42   :  { %v1437_v25 = vadd.f32 %v1436_v24, %v1356_v21  ;;  %v1438_v26 = vpop.f32.mrb[19].mxu1 }
 0xb43   :  { %v1439_v27 = vadd.f32 %v1438_v26, %v1356_v21 }
 0xb44   :  { %v1443_v29 = vmax.f32 %v1437_v25, 0.0 }
 0xb45   :  { %v1444_v30 = vmax.f32 %v1439_v27, 0.0 }
 0xb46   :  { %v2021_v9 = vpack.c.bf16 %v1443_v29, %v1441_v28 }
 0xb47   :  { %v2019_v31 = vpack.c.bf16 %v1444_v30, %v1442_v8 }
 0xb49   :  { %2020 = vmatprep.subr.bf16.mxu0 %v2019_v31 }
 0xb4a   :  { %2022 = vmatpush1.bf16.msra.mxu0 %v2021_v9 }
 0xb4d   :  { %1848 = vmatmul.mubr.msk.f32.vlgmr.msra.gmra.mrb[22].mxu0 %vm1452_vm1, %v1445_v11 }
 0xb4e   :  { %1614 = vmatprep.mubr.f32.mxu0 %v2195_v1 }
 0xc20   :  { %v1522_v37 = vpop.f32.mrb[22].mxu0 }
 0xc21   :  { %v1523_v38 = vadd.f32 %v1522_v37, %v1450_v33  ;;  %v1524_v40 = vpop.f32.mrb[23].mxu0 }
 0xc22   :  { %v1525_v41 = vadd.f32 %v1524_v40, %v1450_v33 }
 0xc23   :  { %v1527_v43 = vadd.f32 %v1523_v38, %v2589_v35  ;;  %v1541_v35 = vpop.permute.xlu0 %1540 }
 0xc24   :  { %v1528_v42 = vadd.f32 %v1525_v41, %v2583_v32  ;;  %v1536_v32 = vpop.permute.xlu1 %1535 }
 0xc26   :  { %1550 = vmatprep.subr.mxu0 %v1528_v42 }
 0xc27   :  { %1551 = vmatpush1.msra.mxu0 %v1527_v43 }
 0xc28   :  { %1849 = vmatmul.mubr.msk.f32.vlgmr.msra.gmra.mrb[24].mxu0 %vm1543_vm15, %v1529_v44  ;;  %v1636_v61 = vpop.permute.xlu1 %1635 }
 0xc29   :  { %1620 = vmatprep.mubr.f32.mxu0 %v2195_v1 }
 0xc2c   :  { %1850 = vmatmul.mubr.msk.f32.gmra.mrb[26].mxu0 %vm1543_vm15, %v1530_v39 }
 0xcfb   :  { %v1616_v45 = vpop.f32.mrb[24].mxu0 }
 0xcfc   :  { %v1618_v47 = vpop.f32.mrb[25].mxu0  ;;  %v1617_v48 = vadd.f32 %v1616_v45, %v1536_v32 }
 0xcfd   :  { %v1619_v49 = vadd.f32 %v1618_v47, %v1536_v32 }
 0xcfe   :  { %v1627_v50 = vmax.f32 %v1617_v48, 0.0 }
 0xcff   :  { %v1622_v51 = vpop.f32.mrb[26].mxu0  ;;  %v1628_v55 = vmax.f32 %v1619_v49, 0.0 }
 0xd00   :  { %v1623_v52 = vadd.f32 %v1622_v51, %v1541_v35  ;;  %v1624_v53 = vpop.f32.mrb[27].mxu0 }
 0xd01   :  { %v1625_v46 = vadd.f32 %v1624_v53, %v1541_v35 }
 0xd02   :  { %v1629_v54 = vmax.f32 %v1623_v52, 0.0 }
 0xd03   :  { %v1630_v56 = vmax.f32 %v1625_v46, 0.0 }
 0xd04   :  { %v2025_v1 = vpack.c.bf16 %v1629_v54, %v1627_v50 }
 0xd05   :  { %v2023_v57 = vpack.c.bf16 %v1630_v56, %v1628_v55 }
 0xd07   :  { %2024 = vmatprep.subr.bf16.mxu1 %v2023_v57 }
 0xd08   :  { %2026 = vmatpush1.bf16.msra.mxu1 %v2025_v1 }
 0xd0b   :  { %1851 = vmatmul.mubr.msk.f32.vlgmr.msra.gmra.mrb[20].mxu1 %vm1452_vm1, %v1631_v58 }
 0xdde   :  { %v1707_v36 = vpop.f32.mrb[20].mxu1 }
 0xddf   :  { %v1708_v34 = vadd.f32 %v1707_v36, %v1636_v61  ;;  %v1709_v62 = vpop.f32.mrb[21].mxu1 }
 0xde0   :  { %v1710_v63 = vadd.f32 %v1709_v62, %v1636_v61 }
 0xde1   :  { %v1712_v0 = vadd.f32 %v1708_v34, %v1527_v43 }
 0xde2   :  { %v1713_v4 = vadd.f32 %v1710_v63, %v1528_v42 }
 0xde3   :  { %v1715_v5 = vrot.slane %v1712_v0, 1  ;;  %v1717_v6 = vrot.slane %v1712_v0, 2 }
 0xde4   :  { %v1722_v10 = vrot.slane %v1713_v4, 7  ;;  %v1853_v12 = vrot.slane %v1713_v4, 9 }
 0xde5   :  { %v1729_v13 = vsel %vm362_vm9, %v1715_v5, %v1713_v4 }
 0xde6   :  { %v1728_v15 = vsel %vm362_vm9, %v1712_v0, %v1722_v10  ;;  %v1730_v16 = vsel %vm362_vm9, %v1717_v6, %v1853_v12 }
 0xde7   :  { %v1734_v23 = vcombine.low %v1728_v15, %v1729_v13  ;;  %v1748_v2 = vrot.slane %v1730_v16, %v1740_v14 }
 0xde9   :  { %v1741_v17 = vrot.slane %v1734_v23, %v1740_v14 }
 0xdeb   :  { %v1749_v18 = vcombine.low %v1741_v17, %v1748_v2 }
 0xded   :  { %1751 = vst [vmem:[#allocation5] sm:$0x3f] %v1749_v18 }
 0xdee   :  { %2176 = shalt.err (!%p2173_p12)
}
 0xdef   :  { %s2875_s23 = sld [smem:[#allocation27_spill]] }
 0xdf5   :  { %s2177_s25 = scalar_lea.hbm %s2875_s23, 96 }
 0xdf6   :  { %p2178_p13 = scmp.ne.s32.totalorder %s2875_s23, %s2177_s25  ;;  %p2181_p0 = scmp.lt.u32.totalorder %s2177_s25, %s2875_s23 }
 0xdf8   :  { %p2183_p1 = pnand %p2181_p0, %p2178_p13 }
 0xdfa   :  { %2186 = shalt.err (!%p2183_p1)
}
 0xdfb   :  { %1761 = dma.vmem_to_hbm [thread:$0]  %s1759_s6, 96, %s2875_s23, [#allocation6]  }
 0xdfc   :  { %2191 = dma.done.wait [#allocation6], 96  }
 0xdfd   :  { %2192 = vsyncadd [#allocation6], 4294967200 }
 0xdfe   :  { %1765 = vsyncpa [#allocation6], 1 }
 0xdff   :  { %1766 = vsyncmov [#allocation4] }
 0xe02   :  { %s1767_s27 = vpop.sfrf %1766 }
 0xe03   :  { %p1854_p2 = scmp.ne.s32.totalorder %s1767_s27, 0 }
 0xe05   :  { %1771 = shalt.err (%p1854_p2)  }
 0xe06   :  { %1773 = vsyncmov [#allocation4 + $0x1] }
 0xe09   :  { %s1774_s14 = vpop.sfrf %1773 }
 0xe0a   :  { %p1855_p3 = scmp.ne.s32.totalorder %s1774_s14, 0 }
 0xe0c   :  { %1778 = shalt.err (%p1855_p3)  }

</bundles_post_ra>
